<compile_context>
chip_gen: v6e
topology: v6e:2x2x1
jax: 0.10.0
libtpu: 0.0.40
codegen_flags: <defaults>
</compile_context>

<pallas_src>
import functools

import jax
import jax.numpy as jnp
from jax import lax
from jax.experimental import pallas as pl
from jax.experimental.pallas import tpu as pltpu

EPS = 1e-5  # nn.BatchNorm2d default eps


def _round_up(x, m):
    return (x + m - 1) // m * m


_COMPILER_PARAMS = pltpu.CompilerParams(
    dimension_semantics=("parallel",),
    vmem_limit_bytes=32 * 1024 * 1024,
)


# ---------------------------------------------------------------------------
# In-kernel helpers (traced inside the kernels)
# ---------------------------------------------------------------------------
def _folded_conv3x3(xcat, w_fold, tj, wp):
    """xcat: (Cin, 3*TJ) guarded window, w_fold: (Cout, 9*Cin) -> (Cout, TJ)."""
    taps = []
    for dy in range(3):
        for dx in range(3):
            off = (dy - 1) * wp + (dx - 1)
            taps.append(xcat[:, tj + off:2 * tj + off])
    cols = jnp.concatenate(taps, axis=0)                       # (9*Cin, TJ)
    return jnp.dot(w_fold, cols, preferred_element_type=jnp.float32)


def _partial_stats(acc, mask):
    """Per-tile BN partials over valid pixels: (Cout, 2) = [sum, sum_sq]."""
    accm = jnp.where(mask > 0.5, acc, 0.0)
    s = jnp.sum(accm, axis=1, keepdims=True)
    sq = jnp.sum(accm * accm, axis=1, keepdims=True)
    return jnp.concatenate([s, sq], axis=1)


# ---------------------------------------------------------------------------
# Pallas kernels
# ---------------------------------------------------------------------------
def _conv_stats_kernel(xl_ref, xc_ref, xr_ref, w_ref, mask_ref,
                       conv_ref, stats_ref, *, wp):
    """Pass 1: conv1 (folded GEMM) + per-tile BN partial sums."""
    tj = xc_ref.shape[1]
    xcat = jnp.concatenate([xl_ref[...], xc_ref[...], xr_ref[...]], axis=1)
    acc = _folded_conv3x3(xcat, w_ref[...], tj, wp)
    conv_ref[...] = acc.astype(conv_ref.dtype)
    stats_ref[...] = _partial_stats(acc, mask_ref[...])


def _bn_relu_conv_stats_kernel(yl_ref, yc_ref, yr_ref, scale_ref, shift_ref,
                               ml_ref, mc_ref, mr_ref, w_ref,
                               conv_ref, stats_ref, *, wp):
    """Pass 2: fused bn1-apply + ReLU + mask -> conv2 + per-tile BN partials.

    The bn1 normalisation is applied on-the-fly to the three raw-conv1 tiles
    (masked to zero at padding / guard positions), so the bn1 output never
    touches HBM.
    """
    tj = yc_ref.shape[1]
    scale = scale_ref[...]
    shift = shift_ref[...]

    def norm(y_ref, m_ref):
        v = jnp.maximum(y_ref[...] * scale + shift, 0.0)
        return jnp.where(m_ref[...] > 0.5, v, 0.0)   # also kills guard garbage

    xcat = jnp.concatenate(
        [norm(yl_ref, ml_ref), norm(yc_ref, mc_ref), norm(yr_ref, mr_ref)],
        axis=1)
    acc = _folded_conv3x3(xcat, w_ref[...], tj, wp)
    conv_ref[...] = acc.astype(conv_ref.dtype)
    stats_ref[...] = _partial_stats(acc, mc_ref[...])


def _bn_add_relu_kernel(y_ref, scale_ref, shift_ref, mask_ref, res_ref,
                        out_ref):
    """Pass 3: bn2-apply + residual add + ReLU (lane-dense output)."""
    v = y_ref[...] * scale_ref[...] + shift_ref[...] + res_ref[...]
    v = jnp.maximum(v, 0.0)
    out_ref[...] = jnp.where(mask_ref[...] > 0.5, v, 0.0)


# ---------------------------------------------------------------------------
# pallas_call wrappers
# ---------------------------------------------------------------------------
def _conv1_stats(xg, w_fold, mask_g, *, tj, wp):
    c, l = xg.shape
    t = l // tj - 2
    c_out = w_fold.shape[0]
    kernel = functools.partial(_conv_stats_kernel, wp=wp)
    return pl.pallas_call(
        kernel,
        grid=(t,),
        in_specs=[
            pl.BlockSpec((c, tj), lambda i: (0, i)),             # left tile
            pl.BlockSpec((c, tj), lambda i: (0, i + 1)),         # centre tile
            pl.BlockSpec((c, tj), lambda i: (0, i + 2)),         # right tile
            pl.BlockSpec((c_out, 9 * c), lambda i: (0, 0)),      # folded W1
            pl.BlockSpec((1, tj), lambda i: (0, i + 1)),         # centre mask
        ],
        out_specs=[
            # raw conv1 written into the data region of a guarded flat array
            # so pass 2 can read left/centre/right views of it directly.
            pl.BlockSpec((c_out, tj), lambda i: (0, i + 1)),
            pl.BlockSpec((None, c_out, 2), lambda i: (i, 0, 0)),
        ],
        out_shape=(
            jax.ShapeDtypeStruct((c_out, l), jnp.float32),
            jax.ShapeDtypeStruct((t, c_out, 2), jnp.float32),
        ),
        compiler_params=_COMPILER_PARAMS,
    )(xg, xg, xg, w_fold, mask_g)


def _bn_relu_conv2_stats(c1g, scale, shift, mask_g, w_fold, *, tj, wp):
    c, l = c1g.shape
    t = l // tj - 2
    mp = t * tj
    c_out = w_fold.shape[0]
    kernel = functools.partial(_bn_relu_conv_stats_kernel, wp=wp)
    return pl.pallas_call(
        kernel,
        grid=(t,),
        in_specs=[
            pl.BlockSpec((c, tj), lambda i: (0, i)),             # conv1 left
            pl.BlockSpec((c, tj), lambda i: (0, i + 1)),         # conv1 centre
            pl.BlockSpec((c, tj), lambda i: (0, i + 2)),         # conv1 right
            pl.BlockSpec((c, 1), lambda i: (0, 0)),              # bn1 scale
            pl.BlockSpec((c, 1), lambda i: (0, 0)),              # bn1 shift
            pl.BlockSpec((1, tj), lambda i: (0, i)),             # mask left
            pl.BlockSpec((1, tj), lambda i: (0, i + 1)),         # mask centre
            pl.BlockSpec((1, tj), lambda i: (0, i + 2)),         # mask right
            pl.BlockSpec((c_out, 9 * c), lambda i: (0, 0)),      # folded W2
        ],
        out_specs=[
            pl.BlockSpec((c_out, tj), lambda i: (0, i)),         # raw conv2
            pl.BlockSpec((None, c_out, 2), lambda i: (i, 0, 0)),
        ],
        out_shape=(
            jax.ShapeDtypeStruct((c_out, mp), jnp.float32),
            jax.ShapeDtypeStruct((t, c_out, 2), jnp.float32),
        ),
        compiler_params=_COMPILER_PARAMS,
    )(c1g, c1g, c1g, scale, shift, mask_g, mask_g, mask_g, w_fold)


def _bn_add_relu(conv_raw, scale, shift, mask_g, residual_g, *, tj):
    c, mp = conv_raw.shape
    t = mp // tj
    return pl.pallas_call(
        _bn_add_relu_kernel,
        grid=(t,),
        in_specs=[
            pl.BlockSpec((c, tj), lambda i: (0, i)),             # raw conv2
            pl.BlockSpec((c, 1), lambda i: (0, 0)),              # bn2 scale
            pl.BlockSpec((c, 1), lambda i: (0, 0)),              # bn2 shift
            pl.BlockSpec((1, tj), lambda i: (0, i + 1)),         # centre mask
            pl.BlockSpec((c, tj), lambda i: (0, i + 1)),         # residual (xg)
        ],
        out_specs=pl.BlockSpec((c, tj), lambda i: (0, i)),
        out_shape=jax.ShapeDtypeStruct((c, mp), jnp.float32),
        compiler_params=_COMPILER_PARAMS,
    )(conv_raw, scale, shift, mask_g, residual_g)


# ---------------------------------------------------------------------------
# Plain-JAX glue (cheap layout plumbing + O(C) BN finalize)
# ---------------------------------------------------------------------------
def _fold_weight(w_oihw):
    # (Cout, Cin, 3, 3) -> (Cout, 9*Cin), tap-major ((ky*3+kx)*Cin + ci).
    c_out, c_in = w_oihw.shape[0], w_oihw.shape[1]
    return jnp.transpose(w_oihw, (0, 2, 3, 1)).reshape(c_out, 9 * c_in)


def _scale_shift(stats, gamma, beta, count):
    s = jnp.sum(stats[:, :, 0], axis=0)
    sq = jnp.sum(stats[:, :, 1], axis=0)
    mean = s / count
    var = sq / count - mean * mean                 # biased batch variance
    inv = gamma * lax.rsqrt(var + EPS)
    scale = inv.reshape(-1, 1).astype(jnp.float32)
    shift = (beta - mean * inv).reshape(-1, 1).astype(jnp.float32)
    return scale, shift


def basic_block_forward(x_nchw, params, *, tile_j=512):
    """BasicBlock forward (stride=1, downsample=None).  Input/output: NCHW."""
    n, c, h, w = x_nchw.shape
    c_out = params["w1"].shape[0]
    assert params["w1"].shape == (c_out, c, 3, 3)
    assert c_out == c, "residual path requires Cin == Cout (downsample=None)"

    hp, wp = h + 2, w + 2
    m = n * hp * wp
    # Tile (multiple of 128 lanes) along the flat pixel axis; must cover the
    # +-(Wp+1) conv halo.
    tj = max(_round_up(wp + 1, 128), min(tile_j, _round_up(m, 128)))
    mp = _round_up(m, tj)
    count = float(n * h * w)

    # --- flat padded layout (C, TJ | Mp | TJ) --------------------------------
    xpad = jnp.pad(x_nchw, ((0, 0), (0, 0), (1, 1), (1, 1)))     # (N,C,Hp,Wp)
    xflat = jnp.transpose(xpad, (1, 0, 2, 3)).reshape(c, m)      # (C, M)
    xg = jnp.pad(xflat, ((0, 0), (tj, mp - m + tj)))             # guarded

    # Guarded validity mask: 1.0 on real (interior) pixels, 0.0 on padding,
    # tail and guard blocks.
    idx = jnp.arange(mp)
    row = (idx // wp) % hp
    col = idx % wp
    valid = (idx < m) & (row >= 1) & (row <= h) & (col >= 1) & (col <= w)
    mask_g = jnp.pad(valid.astype(jnp.float32)[None, :], ((0, 0), (tj, tj)))

    w1 = _fold_weight(params["w1"])
    w2 = _fold_weight(params["w2"])

    # --- pass 1: conv1 + BN partials ----------------------------------------
    c1g, stats1 = _conv1_stats(xg, w1, mask_g, tj=tj, wp=wp)
    scale1, shift1 = _scale_shift(stats1, params["g1"], params["b1"], count)

    # --- pass 2: bn1+relu fused into conv2 + BN partials ---------------------
    conv2, stats2 = _bn_relu_conv2_stats(c1g, scale1, shift1, mask_g, w2,
                                         tj=tj, wp=wp)
    scale2, shift2 = _scale_shift(stats2, params["g2"], params["b2"], count)

    # --- pass 3: bn2 + residual + relu ---------------------------------------
    out_flat = _bn_add_relu(conv2, scale2, shift2, mask_g, xg, tj=tj)

    # --- back to NCHW ---------------------------------------------------------
    out = out_flat[:, :m].reshape(c, n, hp, wp)
    return jnp.transpose(out, (1, 0, 2, 3))[:, :, 1:h + 1, 1:w + 1]


# ---------------------------------------------------------------------------
# Pure-JAX reference (for correctness check)
# ---------------------------------------------------------------------------
def _reference(x_nchw, params):
    def conv(x, w_oihw):
        return lax.conv_general_dilated(
            x, w_oihw, (1, 1), [(1, 1), (1, 1)],
            dimension_numbers=("NCHW", "OIHW", "NCHW"),
            precision=lax.Precision.HIGHEST)

    def bn(x, g, b):
        mean = jnp.mean(x, axis=(0, 2, 3), keepdims=True)
        var = jnp.mean((x - mean) ** 2, axis=(0, 2, 3), keepdims=True)
        return ((x - mean) * lax.rsqrt(var + EPS) * g[None, :, None, None]
                + b[None, :, None, None])

    out = jnp.maximum(bn(conv(x_nchw, params["w1"]), params["g1"],
                         params["b1"]), 0.0)
    out = bn(conv(out, params["w2"]), params["g2"], params["b2"]) + x_nchw
    return jnp.maximum(out, 0.0)


# ---------------------------------------------------------------------------
if __name__ == "__main__":
    N, C, H, W = 2, 8, 16, 16          # inplanes = planes = 8, stride = 1
    key = jax.random.PRNGKey(0)
    kx, k1, k2, kg1, kb1, kg2, kb2 = jax.random.split(key, 7)

    x = jax.random.normal(kx, (N, C, H, W), jnp.float32)

    std = (2.0 / (9 * C)) ** 0.5       # kaiming-style scale, fan_in = 9*Cin
    params = {
        # conv weights in PyTorch OIHW layout: (Cout, Cin, 3, 3)
        "w1": std * jax.random.normal(k1, (C, C, 3, 3), jnp.float32),
        "w2": std * jax.random.normal(k2, (C, C, 3, 3), jnp.float32),
        "g1": 1.0 + 0.1 * jax.random.normal(kg1, (C,), jnp.float32),
        "b1": 0.1 * jax.random.normal(kb1, (C,), jnp.float32),
        "g2": 1.0 + 0.1 * jax.random.normal(kg2, (C,), jnp.float32),
        "b2": 0.1 * jax.random.normal(kb2, (C,), jnp.float32),
    }

    out = jax.jit(basic_block_forward)(x, params)
    out = jax.block_until_ready(out)

    ref = _reference(x, params)
    assert out.shape == (N, C, H, W)
    err = float(jnp.max(jnp.abs(out - ref)))
    assert jnp.allclose(out, ref, atol=1e-3, rtol=1e-3), err

    print("KERNEL_OK")
</pallas_src>

<mosaic_0001>
module attributes {stable_mosaic.version = 11 : i64} {
  func.func @_conv_stats_kernel(%arg0: i32, %arg1: memref<8x512xf32, #tpu.memory_space<vmem>>, %arg2: memref<8x512xf32, #tpu.memory_space<vmem>>, %arg3: memref<8x512xf32, #tpu.memory_space<vmem>>, %arg4: memref<8x72xf32, #tpu.memory_space<vmem>>, %arg5: memref<1x512xf32, #tpu.memory_space<vmem>>, %arg6: memref<8x512xf32, #tpu.memory_space<vmem>>, %arg7: memref<1x8x2xf32, #tpu.memory_space<vmem>>) attributes {dimension_semantics = [#tpu.dimension_semantics<parallel>], iteration_bounds = array<i64: 2>, scalar_prefetch = 0 : i64, scratch_operands = 0 : i64, tpu.core_type = #tpu.core_type<tc>, window_params = [{transform_indices = @transform_0, window_bounds = array<i64: 8, 512>}, {transform_indices = @transform_1, window_bounds = array<i64: 8, 512>}, {transform_indices = @transform_2, window_bounds = array<i64: 8, 512>}, {pipeline_mode = #tpu.pipeline_mode<synchronous>, transform_indices = @transform_3, window_bounds = array<i64: 8, 72>}, {transform_indices = @transform_4, window_bounds = array<i64: 1, 512>}, {transform_indices = @transform_5, window_bounds = array<i64: 8, 512>}, {transform_indices = @transform_6, window_bounds = array<i64: 1, 8, 2>}]} {
    %c0 = arith.constant 0 : index
    %c0_0 = arith.constant 0 : index
    %0 = vector.load %arg1[%c0, %c0_0] : memref<8x512xf32, #tpu.memory_space<vmem>>, vector<8x512xf32>
    %c0_1 = arith.constant 0 : index
    %c0_2 = arith.constant 0 : index
    %1 = vector.load %arg2[%c0_1, %c0_2] : memref<8x512xf32, #tpu.memory_space<vmem>>, vector<8x512xf32>
    %c0_3 = arith.constant 0 : index
    %c0_4 = arith.constant 0 : index
    %2 = vector.load %arg3[%c0_3, %c0_4] : memref<8x512xf32, #tpu.memory_space<vmem>>, vector<8x512xf32>
    %3 = tpu.concatenate %0, %1, %2 in 1 : vector<8x512xf32>, vector<8x512xf32>, vector<8x512xf32> -> vector<8x1536xf32>
    %c0_5 = arith.constant 0 : index
    %c0_6 = arith.constant 0 : index
    %4 = vector.load %arg4[%c0_5, %c0_6] : memref<8x72xf32, #tpu.memory_space<vmem>>, vector<8x72xf32>
    %5 = vector.extract_strided_slice %3 {offsets = [0, 493], sizes = [8, 512], strides = [1, 1]} : vector<8x1536xf32> to vector<8x512xf32>
    %6 = vector.extract_strided_slice %3 {offsets = [0, 494], sizes = [8, 512], strides = [1, 1]} : vector<8x1536xf32> to vector<8x512xf32>
    %7 = vector.extract_strided_slice %3 {offsets = [0, 495], sizes = [8, 512], strides = [1, 1]} : vector<8x1536xf32> to vector<8x512xf32>
    %8 = vector.extract_strided_slice %3 {offsets = [0, 511], sizes = [8, 512], strides = [1, 1]} : vector<8x1536xf32> to vector<8x512xf32>
    %9 = vector.extract_strided_slice %3 {offsets = [0, 512], sizes = [8, 512], strides = [1, 1]} : vector<8x1536xf32> to vector<8x512xf32>
    %10 = vector.extract_strided_slice %3 {offsets = [0, 513], sizes = [8, 512], strides = [1, 1]} : vector<8x1536xf32> to vector<8x512xf32>
    %11 = vector.extract_strided_slice %3 {offsets = [0, 529], sizes = [8, 512], strides = [1, 1]} : vector<8x1536xf32> to vector<8x512xf32>
    %12 = vector.extract_strided_slice %3 {offsets = [0, 530], sizes = [8, 512], strides = [1, 1]} : vector<8x1536xf32> to vector<8x512xf32>
    %13 = vector.extract_strided_slice %3 {offsets = [0, 531], sizes = [8, 512], strides = [1, 1]} : vector<8x1536xf32> to vector<8x512xf32>
    %14 = tpu.concatenate %5, %6, %7, %8, %9, %10, %11, %12, %13 in 0 : vector<8x512xf32>, vector<8x512xf32>, vector<8x512xf32>, vector<8x512xf32>, vector<8x512xf32>, vector<8x512xf32>, vector<8x512xf32>, vector<8x512xf32>, vector<8x512xf32> -> vector<72x512xf32>
    %cst = arith.constant dense<0.000000e+00> : vector<8x512xf32>
    %15 = tpu.matmul %4, %14, %cst {dimension_numbers = #tpu.dot_dimension_numbers<[1], [0], [0], [1], [0, 0, 1, 1], [], []>} : vector<8x72xf32>, vector<72x512xf32>, vector<8x512xf32> -> vector<8x512xf32>
    %c0_7 = arith.constant 0 : index
    %c0_8 = arith.constant 0 : index
    %16 = vector.load %arg6[%c0_7, %c0_8] : memref<8x512xf32, #tpu.memory_space<vmem>>, vector<8x512xf32>
    tpu.vector_store %arg6[%c0_7, %c0_8], %15 {strides = array<i32>} : memref<8x512xf32, #tpu.memory_space<vmem>>, vector<8x512xf32>,
    %c0_9 = arith.constant 0 : index
    %c0_10 = arith.constant 0 : index
    %17 = vector.load %arg5[%c0_9, %c0_10] : memref<1x512xf32, #tpu.memory_space<vmem>>, vector<1x512xf32>
    %cst_11 = arith.constant 5.000000e-01 : f32
    %18 = vector.broadcast %cst_11 : f32 to vector<1x512xf32>
    %19 = arith.cmpf ogt, %17, %18 : vector<1x512xf32>
    %cst_12 = arith.constant 0.000000e+00 : f32
    %20 = vector.shape_cast %19 : vector<1x512xi1> to vector<1x512xi1>
    %21 = vector.broadcast %20 : vector<1x512xi1> to vector<8x512xi1>
    %22 = vector.broadcast %cst_12 : f32 to vector<8x512xf32>
    %23 = arith.select %21, %15, %22 : vector<8x512xi1>, vector<8x512xf32>
    %cst_13 = arith.constant dense<0.000000e+00> : vector<8xf32>
    %24 = vector.multi_reduction <add>, %23, %cst_13 [1] : vector<8x512xf32> to vector<8xf32>
    %25 = vector.shape_cast %24 : vector<8xf32> to vector<8x1xf32>
    %26 = arith.mulf %23, %23 : vector<8x512xf32>
    %cst_14 = arith.constant dense<0.000000e+00> : vector<8xf32>
    %27 = vector.multi_reduction <add>, %26, %cst_14 [1] : vector<8x512xf32> to vector<8xf32>
    %28 = vector.shape_cast %27 : vector<8xf32> to vector<8x1xf32>
    %29 = tpu.concatenate %25, %28 in 1 : vector<8x1xf32>, vector<8x1xf32> -> vector<8x2xf32>
    %c0_15 = arith.constant 0 : index
    %c0_16 = arith.constant 0 : index
    %c0_17 = arith.constant 0 : index
    %30 = vector.load %arg7[%c0_15, %c0_16, %c0_17] : memref<1x8x2xf32, #tpu.memory_space<vmem>>, vector<1x8x2xf32>
    %31 = vector.shape_cast %30 : vector<1x8x2xf32> to vector<8x2xf32>
    %32 = vector.shape_cast %29 : vector<8x2xf32> to vector<1x8x2xf32>
    tpu.vector_store %arg7[%c0_15, %c0_16, %c0_17], %32 {strides = array<i32>} : memref<1x8x2xf32, #tpu.memory_space<vmem>>, vector<1x8x2xf32>,
    return
  }
  func.func @transform_0(%arg0: i32) -> (i32, i32) {
    %c0_i32 = arith.constant 0 : i32
    %c0_i32_0 = arith.constant 0 : i32
    return %c0_i32, %arg0 : i32, i32
  }
  func.func @transform_1(%arg0: i32) -> (i32, i32) {
    %c1_i32 = arith.constant 1 : i32
    %0 = arith.addi %arg0, %c1_i32 : i32
    %c0_i32 = arith.constant 0 : i32
    %c0_i32_0 = arith.constant 0 : i32
    return %c0_i32, %0 : i32, i32
  }
  func.func @transform_2(%arg0: i32) -> (i32, i32) {
    %c2_i32 = arith.constant 2 : i32
    %0 = arith.addi %arg0, %c2_i32 : i32
    %c0_i32 = arith.constant 0 : i32
    %c0_i32_0 = arith.constant 0 : i32
    return %c0_i32, %0 : i32, i32
  }
  func.func @transform_3(%arg0: i32) -> (i32, i32) {
    %c0_i32 = arith.constant 0 : i32
    %c0_i32_0 = arith.constant 0 : i32
    %c0_i32_1 = arith.constant 0 : i32
    return %c0_i32, %c0_i32_0 : i32, i32
  }
  func.func @transform_4(%arg0: i32) -> (i32, i32) {
    %c1_i32 = arith.constant 1 : i32
    %0 = arith.addi %arg0, %c1_i32 : i32
    %c0_i32 = arith.constant 0 : i32
    %c0_i32_0 = arith.constant 0 : i32
    return %c0_i32, %0 : i32, i32
  }
  func.func @transform_5(%arg0: i32) -> (i32, i32) {
    %c1_i32 = arith.constant 1 : i32
    %0 = arith.addi %arg0, %c1_i32 : i32
    %c0_i32 = arith.constant 0 : i32
    %c0_i32_0 = arith.constant 0 : i32
    return %c0_i32, %0 : i32, i32
  }
  func.func @transform_6(%arg0: i32) -> (i32, i32, i32) {
    %c0_i32 = arith.constant 0 : i32
    %c0_i32_0 = arith.constant 0 : i32
    %c0_i32_1 = arith.constant 0 : i32
    return %arg0, %c0_i32, %c0_i32_0 : i32, i32, i32
  }
}

module attributes {stable_mosaic.version = 11 : i64} {
  func.func @_bn_relu_conv_stats_kernel(%arg0: i32, %arg1: memref<8x512xf32, #tpu.memory_space<vmem>>, %arg2: memref<8x512xf32, #tpu.memory_space<vmem>>, %arg3: memref<8x512xf32, #tpu.memory_space<vmem>>, %arg4: memref<8x1xf32, #tpu.memory_space<vmem>>, %arg5: memref<8x1xf32, #tpu.memory_space<vmem>>, %arg6: memref<1x512xf32, #tpu.memory_space<vmem>>, %arg7: memref<1x512xf32, #tpu.memory_space<vmem>>, %arg8: memref<1x512xf32, #tpu.memory_space<vmem>>, %arg9: memref<8x72xf32, #tpu.memory_space<vmem>>, %arg10: memref<8x512xf32, #tpu.memory_space<vmem>>, %arg11: memref<1x8x2xf32, #tpu.memory_space<vmem>>) attributes {dimension_semantics = [#tpu.dimension_semantics<parallel>], iteration_bounds = array<i64: 2>, scalar_prefetch = 0 : i64, scratch_operands = 0 : i64, tpu.core_type = #tpu.core_type<tc>, window_params = [{transform_indices = @transform_0, window_bounds = array<i64: 8, 512>}, {transform_indices = @transform_1, window_bounds = array<i64: 8, 512>}, {transform_indices = @transform_2, window_bounds = array<i64: 8, 512>}, {pipeline_mode = #tpu.pipeline_mode<synchronous>, transform_indices = @transform_3, window_bounds = array<i64: 8, 1>}, {pipeline_mode = #tpu.pipeline_mode<synchronous>, transform_indices = @transform_4, window_bounds = array<i64: 8, 1>}, {transform_indices = @transform_5, window_bounds = array<i64: 1, 512>}, {transform_indices = @transform_6, window_bounds = array<i64: 1, 512>}, {transform_indices = @transform_7, window_bounds = array<i64: 1, 512>}, {pipeline_mode = #tpu.pipeline_mode<synchronous>, transform_indices = @transform_8, window_bounds = array<i64: 8, 72>}, {transform_indices = @transform_9, window_bounds = array<i64: 8, 512>}, {transform_indices = @transform_10, window_bounds = array<i64: 1, 8, 2>}]} {
    %c0 = arith.constant 0 : index
    %c0_0 = arith.constant 0 : index
    %0 = vector.load %arg4[%c0, %c0_0] : memref<8x1xf32, #tpu.memory_space<vmem>>, vector<8x1xf32>
    %c0_1 = arith.constant 0 : index
    %c0_2 = arith.constant 0 : index
    %1 = vector.load %arg5[%c0_1, %c0_2] : memref<8x1xf32, #tpu.memory_space<vmem>>, vector<8x1xf32>
    %c0_3 = arith.constant 0 : index
    %c0_4 = arith.constant 0 : index
    %2 = vector.load %arg1[%c0_3, %c0_4] : memref<8x512xf32, #tpu.memory_space<vmem>>, vector<8x512xf32>
    %3 = vector.broadcast %0 : vector<8x1xf32> to vector<8x512xf32>
    %4 = arith.mulf %2, %3 : vector<8x512xf32>
    %5 = vector.broadcast %1 : vector<8x1xf32> to vector<8x512xf32>
    %6 = arith.addf %4, %5 : vector<8x512xf32>
    %cst = arith.constant 0.000000e+00 : f32
    %7 = vector.broadcast %cst : f32 to vector<8x512xf32>
    %8 = arith.maximumf %6, %7 : vector<8x512xf32>
    %c0_5 = arith.constant 0 : index
    %c0_6 = arith.constant 0 : index
    %9 = vector.load %arg6[%c0_5, %c0_6] : memref<1x512xf32, #tpu.memory_space<vmem>>, vector<1x512xf32>
    %cst_7 = arith.constant 5.000000e-01 : f32
    %10 = vector.broadcast %cst_7 : f32 to vector<1x512xf32>
    %11 = arith.cmpf ogt, %9, %10 : vector<1x512xf32>
    %cst_8 = arith.constant 0.000000e+00 : f32
    %12 = vector.shape_cast %11 : vector<1x512xi1> to vector<1x512xi1>
    %13 = vector.broadcast %12 : vector<1x512xi1> to vector<8x512xi1>
    %14 = vector.broadcast %cst_8 : f32 to vector<8x512xf32>
    %15 = arith.select %13, %8, %14 : vector<8x512xi1>, vector<8x512xf32>
    %c0_9 = arith.constant 0 : index
    %c0_10 = arith.constant 0 : index
    %16 = vector.load %arg2[%c0_9, %c0_10] : memref<8x512xf32, #tpu.memory_space<vmem>>, vector<8x512xf32>
    %17 = vector.broadcast %0 : vector<8x1xf32> to vector<8x512xf32>
    %18 = arith.mulf %16, %17 : vector<8x512xf32>
    %19 = vector.broadcast %1 : vector<8x1xf32> to vector<8x512xf32>
    %20 = arith.addf %18, %19 : vector<8x512xf32>
    %cst_11 = arith.constant 0.000000e+00 : f32
    %21 = vector.broadcast %cst_11 : f32 to vector<8x512xf32>
    %22 = arith.maximumf %20, %21 : vector<8x512xf32>
    %c0_12 = arith.constant 0 : index
    %c0_13 = arith.constant 0 : index
    %23 = vector.load %arg7[%c0_12, %c0_13] : memref<1x512xf32, #tpu.memory_space<vmem>>, vector<1x512xf32>
    %cst_14 = arith.constant 5.000000e-01 : f32
    %24 = vector.broadcast %cst_14 : f32 to vector<1x512xf32>
    %25 = arith.cmpf ogt, %23, %24 : vector<1x512xf32>
    %cst_15 = arith.constant 0.000000e+00 : f32
    %26 = vector.shape_cast %25 : vector<1x512xi1> to vector<1x512xi1>
    %27 = vector.broadcast %26 : vector<1x512xi1> to vector<8x512xi1>
    %28 = vector.broadcast %cst_15 : f32 to vector<8x512xf32>
    %29 = arith.select %27, %22, %28 : vector<8x512xi1>, vector<8x512xf32>
    %c0_16 = arith.constant 0 : index
    %c0_17 = arith.constant 0 : index
    %30 = vector.load %arg3[%c0_16, %c0_17] : memref<8x512xf32, #tpu.memory_space<vmem>>, vector<8x512xf32>
    %31 = vector.broadcast %0 : vector<8x1xf32> to vector<8x512xf32>
    %32 = arith.mulf %30, %31 : vector<8x512xf32>
    %33 = vector.broadcast %1 : vector<8x1xf32> to vector<8x512xf32>
    %34 = arith.addf %32, %33 : vector<8x512xf32>
    %cst_18 = arith.constant 0.000000e+00 : f32
    %35 = vector.broadcast %cst_18 : f32 to vector<8x512xf32>
    %36 = arith.maximumf %34, %35 : vector<8x512xf32>
    %c0_19 = arith.constant 0 : index
    %c0_20 = arith.constant 0 : index
    %37 = vector.load %arg8[%c0_19, %c0_20] : memref<1x512xf32, #tpu.memory_space<vmem>>, vector<1x512xf32>
    %cst_21 = arith.constant 5.000000e-01 : f32
    %38 = vector.broadcast %cst_21 : f32 to vector<1x512xf32>
    %39 = arith.cmpf ogt, %37, %38 : vector<1x512xf32>
    %cst_22 = arith.constant 0.000000e+00 : f32
    %40 = vector.shape_cast %39 : vector<1x512xi1> to vector<1x512xi1>
    %41 = vector.broadcast %40 : vector<1x512xi1> to vector<8x512xi1>
    %42 = vector.broadcast %cst_22 : f32 to vector<8x512xf32>
    %43 = arith.select %41, %36, %42 : vector<8x512xi1>, vector<8x512xf32>
    %44 = tpu.concatenate %15, %29, %43 in 1 : vector<8x512xf32>, vector<8x512xf32>, vector<8x512xf32> -> vector<8x1536xf32>
    %c0_23 = arith.constant 0 : index
    %c0_24 = arith.constant 0 : index
    %45 = vector.load %arg9[%c0_23, %c0_24] : memref<8x72xf32, #tpu.memory_space<vmem>>, vector<8x72xf32>
    %46 = vector.extract_strided_slice %44 {offsets = [0, 493], sizes = [8, 512], strides = [1, 1]} : vector<8x1536xf32> to vector<8x512xf32>
    %47 = vector.extract_strided_slice %44 {offsets = [0, 494], sizes = [8, 512], strides = [1, 1]} : vector<8x1536xf32> to vector<8x512xf32>
    %48 = vector.extract_strided_slice %44 {offsets = [0, 495], sizes = [8, 512], strides = [1, 1]} : vector<8x1536xf32> to vector<8x512xf32>
    %49 = vector.extract_strided_slice %44 {offsets = [0, 511], sizes = [8, 512], strides = [1, 1]} : vector<8x1536xf32> to vector<8x512xf32>
    %50 = vector.extract_strided_slice %44 {offsets = [0, 512], sizes = [8, 512], strides = [1, 1]} : vector<8x1536xf32> to vector<8x512xf32>
    %51 = vector.extract_strided_slice %44 {offsets = [0, 513], sizes = [8, 512], strides = [1, 1]} : vector<8x1536xf32> to vector<8x512xf32>
    %52 = vector.extract_strided_slice %44 {offsets = [0, 529], sizes = [8, 512], strides = [1, 1]} : vector<8x1536xf32> to vector<8x512xf32>
    %53 = vector.extract_strided_slice %44 {offsets = [0, 530], sizes = [8, 512], strides = [1, 1]} : vector<8x1536xf32> to vector<8x512xf32>
    %54 = vector.extract_strided_slice %44 {offsets = [0, 531], sizes = [8, 512], strides = [1, 1]} : vector<8x1536xf32> to vector<8x512xf32>
    %55 = tpu.concatenate %46, %47, %48, %49, %50, %51, %52, %53, %54 in 0 : vector<8x512xf32>, vector<8x512xf32>, vector<8x512xf32>, vector<8x512xf32>, vector<8x512xf32>, vector<8x512xf32>, vector<8x512xf32>, vector<8x512xf32>, vector<8x512xf32> -> vector<72x512xf32>
    %cst_25 = arith.constant dense<0.000000e+00> : vector<8x512xf32>
    %56 = tpu.matmul %45, %55, %cst_25 {dimension_numbers = #tpu.dot_dimension_numbers<[1], [0], [0], [1], [0, 0, 1, 1], [], []>} : vector<8x72xf32>, vector<72x512xf32>, vector<8x512xf32> -> vector<8x512xf32>
    %c0_26 = arith.constant 0 : index
    %c0_27 = arith.constant 0 : index
    %57 = vector.load %arg10[%c0_26, %c0_27] : memref<8x512xf32, #tpu.memory_space<vmem>>, vector<8x512xf32>
    tpu.vector_store %arg10[%c0_26, %c0_27], %56 {strides = array<i32>} : memref<8x512xf32, #tpu.memory_space<vmem>>, vector<8x512xf32>,
    %c0_28 = arith.constant 0 : index
    %c0_29 = arith.constant 0 : index
    %58 = vector.load %arg7[%c0_28, %c0_29] : memref<1x512xf32, #tpu.memory_space<vmem>>, vector<1x512xf32>
    %cst_30 = arith.constant 5.000000e-01 : f32
    %59 = vector.broadcast %cst_30 : f32 to vector<1x512xf32>
    %60 = arith.cmpf ogt, %58, %59 : vector<1x512xf32>
    %cst_31 = arith.constant 0.000000e+00 : f32
    %61 = vector.shape_cast %60 : vector<1x512xi1> to vector<1x512xi1>
    %62 = vector.broadcast %61 : vector<1x512xi1> to vector<8x512xi1>
    %63 = vector.broadcast %cst_31 : f32 to vector<8x512xf32>
    %64 = arith.select %62, %56, %63 : vector<8x512xi1>, vector<8x512xf32>
    %cst_32 = arith.constant dense<0.000000e+00> : vector<8xf32>
    %65 = vector.multi_reduction <add>, %64, %cst_32 [1] : vector<8x512xf32> to vector<8xf32>
    %66 = vector.shape_cast %65 : vector<8xf32> to vector<8x1xf32>
    %67 = arith.mulf %64, %64 : vector<8x512xf32>
    %cst_33 = arith.constant dense<0.000000e+00> : vector<8xf32>
    %68 = vector.multi_reduction <add>, %67, %cst_33 [1] : vector<8x512xf32> to vector<8xf32>
    %69 = vector.shape_cast %68 : vector<8xf32> to vector<8x1xf32>
    %70 = tpu.concatenate %66, %69 in 1 : vector<8x1xf32>, vector<8x1xf32> -> vector<8x2xf32>
    %c0_34 = arith.constant 0 : index
    %c0_35 = arith.constant 0 : index
    %c0_36 = arith.constant 0 : index
    %71 = vector.load %arg11[%c0_34, %c0_35, %c0_36] : memref<1x8x2xf32, #tpu.memory_space<vmem>>, vector<1x8x2xf32>
    %72 = vector.shape_cast %71 : vector<1x8x2xf32> to vector<8x2xf32>
    %73 = vector.shape_cast %70 : vector<8x2xf32> to vector<1x8x2xf32>
    tpu.vector_store %arg11[%c0_34, %c0_35, %c0_36], %73 {strides = array<i32>} : memref<1x8x2xf32, #tpu.memory_space<vmem>>, vector<1x8x2xf32>,
    return
  }
  func.func @transform_0(%arg0: i32) -> (i32, i32) {
    %c0_i32 = arith.constant 0 : i32
    %c0_i32_0 = arith.constant 0 : i32
    return %c0_i32, %arg0 : i32, i32
  }
  func.func @transform_1(%arg0: i32) -> (i32, i32) {
    %c1_i32 = arith.constant 1 : i32
    %0 = arith.addi %arg0, %c1_i32 : i32
    %c0_i32 = arith.constant 0 : i32
    %c0_i32_0 = arith.constant 0 : i32
    return %c0_i32, %0 : i32, i32
  }
  func.func @transform_2(%arg0: i32) -> (i32, i32) {
    %c2_i32 = arith.constant 2 : i32
    %0 = arith.addi %arg0, %c2_i32 : i32
    %c0_i32 = arith.constant 0 : i32
    %c0_i32_0 = arith.constant 0 : i32
    return %c0_i32, %0 : i32, i32
  }
  func.func @transform_3(%arg0: i32) -> (i32, i32) {
    %c0_i32 = arith.constant 0 : i32
    %c0_i32_0 = arith.constant 0 : i32
    %c0_i32_1 = arith.constant 0 : i32
    return %c0_i32, %c0_i32_0 : i32, i32
  }
  func.func @transform_4(%arg0: i32) -> (i32, i32) {
    %c0_i32 = arith.constant 0 : i32
    %c0_i32_0 = arith.constant 0 : i32
    %c0_i32_1 = arith.constant 0 : i32
    return %c0_i32, %c0_i32_0 : i32, i32
  }
  func.func @transform_5(%arg0: i32) -> (i32, i32) {
    %c0_i32 = arith.constant 0 : i32
    %c0_i32_0 = arith.constant 0 : i32
    return %c0_i32, %arg0 : i32, i32
  }
  func.func @transform_6(%arg0: i32) -> (i32, i32) {
    %c1_i32 = arith.constant 1 : i32
    %0 = arith.addi %arg0, %c1_i32 : i32
    %c0_i32 = arith.constant 0 : i32
    %c0_i32_0 = arith.constant 0 : i32
    return %c0_i32, %0 : i32, i32
  }
  func.func @transform_7(%arg0: i32) -> (i32, i32) {
    %c2_i32 = arith.constant 2 : i32
    %0 = arith.addi %arg0, %c2_i32 : i32
    %c0_i32 = arith.constant 0 : i32
    %c0_i32_0 = arith.constant 0 : i32
    return %c0_i32, %0 : i32, i32
  }
  func.func @transform_8(%arg0: i32) -> (i32, i32) {
    %c0_i32 = arith.constant 0 : i32
    %c0_i32_0 = arith.constant 0 : i32
    %c0_i32_1 = arith.constant 0 : i32
    return %c0_i32, %c0_i32_0 : i32, i32
  }
  func.func @transform_9(%arg0: i32) -> (i32, i32) {
    %c0_i32 = arith.constant 0 : i32
    %c0_i32_0 = arith.constant 0 : i32
    return %c0_i32, %arg0 : i32, i32
  }
  func.func @transform_10(%arg0: i32) -> (i32, i32, i32) {
    %c0_i32 = arith.constant 0 : i32
    %c0_i32_0 = arith.constant 0 : i32
    %c0_i32_1 = arith.constant 0 : i32
    return %arg0, %c0_i32, %c0_i32_0 : i32, i32, i32
  }
}

module attributes {stable_mosaic.version = 11 : i64} {
  func.func @_bn_add_relu_kernel(%arg0: i32, %arg1: memref<8x512xf32, #tpu.memory_space<vmem>>, %arg2: memref<8x1xf32, #tpu.memory_space<vmem>>, %arg3: memref<8x1xf32, #tpu.memory_space<vmem>>, %arg4: memref<1x512xf32, #tpu.memory_space<vmem>>, %arg5: memref<8x512xf32, #tpu.memory_space<vmem>>, %arg6: memref<8x512xf32, #tpu.memory_space<vmem>>) attributes {dimension_semantics = [#tpu.dimension_semantics<parallel>], iteration_bounds = array<i64: 2>, scalar_prefetch = 0 : i64, scratch_operands = 0 : i64, tpu.core_type = #tpu.core_type<tc>, window_params = [{transform_indices = @transform_0, window_bounds = array<i64: 8, 512>}, {pipeline_mode = #tpu.pipeline_mode<synchronous>, transform_indices = @transform_1, window_bounds = array<i64: 8, 1>}, {pipeline_mode = #tpu.pipeline_mode<synchronous>, transform_indices = @transform_2, window_bounds = array<i64: 8, 1>}, {transform_indices = @transform_3, window_bounds = array<i64: 1, 512>}, {transform_indices = @transform_4, window_bounds = array<i64: 8, 512>}, {transform_indices = @transform_5, window_bounds = array<i64: 8, 512>}]} {
    %c0 = arith.constant 0 : index
    %c0_0 = arith.constant 0 : index
    %0 = vector.load %arg1[%c0, %c0_0] : memref<8x512xf32, #tpu.memory_space<vmem>>, vector<8x512xf32>
    %c0_1 = arith.constant 0 : index
    %c0_2 = arith.constant 0 : index
    %1 = vector.load %arg2[%c0_1, %c0_2] : memref<8x1xf32, #tpu.memory_space<vmem>>, vector<8x1xf32>
    %2 = vector.broadcast %1 : vector<8x1xf32> to vector<8x512xf32>
    %3 = arith.mulf %0, %2 : vector<8x512xf32>
    %c0_3 = arith.constant 0 : index
    %c0_4 = arith.constant 0 : index
    %4 = vector.load %arg3[%c0_3, %c0_4] : memref<8x1xf32, #tpu.memory_space<vmem>>, vector<8x1xf32>
    %5 = vector.broadcast %4 : vector<8x1xf32> to vector<8x512xf32>
    %6 = arith.addf %3, %5 : vector<8x512xf32>
    %c0_5 = arith.constant 0 : index
    %c0_6 = arith.constant 0 : index
    %7 = vector.load %arg5[%c0_5, %c0_6] : memref<8x512xf32, #tpu.memory_space<vmem>>, vector<8x512xf32>
    %8 = arith.addf %6, %7 : vector<8x512xf32>
    %cst = arith.constant 0.000000e+00 : f32
    %9 = vector.broadcast %cst : f32 to vector<8x512xf32>
    %10 = arith.maximumf %8, %9 : vector<8x512xf32>
    %c0_7 = arith.constant 0 : index
    %c0_8 = arith.constant 0 : index
    %11 = vector.load %arg4[%c0_7, %c0_8] : memref<1x512xf32, #tpu.memory_space<vmem>>, vector<1x512xf32>
    %cst_9 = arith.constant 5.000000e-01 : f32
    %12 = vector.broadcast %cst_9 : f32 to vector<1x512xf32>
    %13 = arith.cmpf ogt, %11, %12 : vector<1x512xf32>
    %cst_10 = arith.constant 0.000000e+00 : f32
    %14 = vector.shape_cast %13 : vector<1x512xi1> to vector<1x512xi1>
    %15 = vector.broadcast %14 : vector<1x512xi1> to vector<8x512xi1>
    %16 = vector.broadcast %cst_10 : f32 to vector<8x512xf32>
    %17 = arith.select %15, %10, %16 : vector<8x512xi1>, vector<8x512xf32>
    %c0_11 = arith.constant 0 : index
    %c0_12 = arith.constant 0 : index
    %18 = vector.load %arg6[%c0_11, %c0_12] : memref<8x512xf32, #tpu.memory_space<vmem>>, vector<8x512xf32>
    tpu.vector_store %arg6[%c0_11, %c0_12], %17 {strides = array<i32>} : memref<8x512xf32, #tpu.memory_space<vmem>>, vector<8x512xf32>,
    return
  }
  func.func @transform_0(%arg0: i32) -> (i32, i32) {
    %c0_i32 = arith.constant 0 : i32
    %c0_i32_0 = arith.constant 0 : i32
    return %c0_i32, %arg0 : i32, i32
  }
  func.func @transform_1(%arg0: i32) -> (i32, i32) {
    %c0_i32 = arith.constant 0 : i32
    %c0_i32_0 = arith.constant 0 : i32
    %c0_i32_1 = arith.constant 0 : i32
    return %c0_i32, %c0_i32_0 : i32, i32
  }
  func.func @transform_2(%arg0: i32) -> (i32, i32) {
    %c0_i32 = arith.constant 0 : i32
    %c0_i32_0 = arith.constant 0 : i32
    %c0_i32_1 = arith.constant 0 : i32
    return %c0_i32, %c0_i32_0 : i32, i32
  }
  func.func @transform_3(%arg0: i32) -> (i32, i32) {
    %c1_i32 = arith.constant 1 : i32
    %0 = arith.addi %arg0, %c1_i32 : i32
    %c0_i32 = arith.constant 0 : i32
    %c0_i32_0 = arith.constant 0 : i32
    return %c0_i32, %0 : i32, i32
  }
  func.func @transform_4(%arg0: i32) -> (i32, i32) {
    %c1_i32 = arith.constant 1 : i32
    %0 = arith.addi %arg0, %c1_i32 : i32
    %c0_i32 = arith.constant 0 : i32
    %c0_i32_0 = arith.constant 0 : i32
    return %c0_i32, %0 : i32, i32
  }
  func.func @transform_5(%arg0: i32) -> (i32, i32) {
    %c0_i32 = arith.constant 0 : i32
    %c0_i32_0 = arith.constant 0 : i32
    return %c0_i32, %arg0 : i32, i32
  }
}

</mosaic_0001>

<bundles_post_ra>
// kernel: basic_block_forward.5
= control target key start
LH: loop header
LB: loop body
LE: loop exit
PB: predicated region body
PF: predicated region fallthrough
CT: control target
= control target key end

     0   :  { %s494_s18 = smov 0   ;;  %s530_s0 = inlined_call_operand.vmem [shape: f32[8,1024], index: 0, kind: input, shape index: {}]   ;;  %s531_s1 = inlined_call_operand.vmem [shape: f32[8,1], index: 1, kind: input, shape index: {}]   ;;  %s532_s2 = inlined_call_operand.vmem [shape: f32[8,1], index: 2, kind: input, shape index: {}]   ;;  %s533_s3 = inlined_call_operand.vmem [shape: f32[1,2048], index: 3, kind: input, shape index: {}]   ;;  %s534_s4 = inlined_call_operand.vmem [shape: f32[8,2048], index: 4, kind: input, shape index: {}]   ;;  %s535_s5 = inlined_call_operand.vmem [shape: f32[8,1024], index: 5, kind: output, shape index: {}]  }
   0x1 LB: > { %s427_s19 = sadd.s32 4294967295, %s461_s18   ;;  %p431_p0 = scmp.ge.s32.totalorder %s461_s18, 1  ;;  %s461_s18 = sphi %s494_s18, %s15_s18  }
   0x2   : > { %p217_p1 = scmp.lt.s32.totalorder %s461_s18, 3 }
   0x4   : > { %p218_p2 = pnand %p431_p0, %p217_p1 }
   0x5   : > { %s432_s24 = sshll.u32 (!%p218_p2), %s427_s19, 2 }
   0x6   : > { %221 = sbr.rel (%p218_p2) target bundleno = 150 (0x96), region = 40  ;;  %s442_s25 = sadd.s32 (!%p218_p2), 4, %s432_s24 }
   0x7   : > { %p264_p3 = scmp.lt.s32.totalorder (!%p218_p2), %s442_s25, 15  ;;  %p257_p4 = scmp.lt.s32.totalorder (!%p218_p2), %s432_s24, 7 }
   0xb   : > { %v287_v0 = vld [vmem:[%s531_s1] sm:$0xff]  ;;  %v463_v1 = vmov 0   ;;  %s537_s25 = smov (!%p264_p3, %s442_s25), 15  ;;  %s539_s24 = smov (!%p257_p4, %s432_s24), 7  ;;  %v322_v3 = vlaneseq }
   0xc   : > { %454 = vset.pattern.permute.xlu0 %v463_v1  ;;  %v297_v2 = vld [vmem:[%s532_s2] sm:$0xff]  ;;  %s266_s28 = scalar_lea.vmem %s533_s3, %s537_s25  ;;  %s433_s29 = sshll.u32 %s539_s24, 3 }
   0xd   : > { %290 = vperm.xlu0 %454, %v287_v0   ;;  %v319_v4 = vld [vmem:[%s266_s28] sm:$0xf]  ;;  %v323_v5 = vshrl.u32 %v322_v3, 7  ;;  %s260_s7 = scalar_lea.vmem %s530_s0, %s433_s29  ;;  %s436_s8 = sshll.u32 %s537_s25, 3 }
   0xe   : > { %vm320_vm0 = vcmp.gt.f32.partialorder %v319_v4, 0.5  ;;  %v283_v6 = vld [vmem:[%s260_s7] sm:$0xff]  ;;  %s274_s11 = scalar_lea.vmem %s534_s4, %s436_s8  ;;  %v284_v10 = vld [vmem:[%s260_s7 + $0x8] sm:$0xff]  ;;  %v285_v11 = vld [vmem:[%s260_s7 + $0x10] sm:$0xff]  ;;  %s281_s14 = scalar_lea.vmem %s535_s5, %s433_s29 }
   0xf   : > { %v324_v7 = vsub.s32 0, %v323_v5  ;;  %v328_v8 = vsub.s32 1, %v323_v5  ;;  %v286_v12 = vld [vmem:[%s260_s7 + $0x18] sm:$0xff]  ;;  %v321_v13 = vsel %vm320_vm0, 1, %v463_v1  ;;  %v332_v14 = vsub.s32 2, %v323_v5  ;;  %v307_v20 = vld [vmem:[%s274_s11] sm:$0xff] }
  0x10   : > { %v336_v15 = vsub.s32 3, %v323_v5  ;;  %v308_v24 = vld [vmem:[%s274_s11 + $0x8] sm:$0xff]  ;;  %v309_v25 = vld [vmem:[%s274_s11 + $0x10] sm:$0xff]  ;;  %v310_v26 = vld [vmem:[%s274_s11 + $0x18] sm:$0xff] }
  0x11   : > { %300 = vperm.xlu0 %454, %v297_v2   ;;  %v325_v21 = vrot.slane %v321_v13, %v324_v7  ;;  %v329_v22 = vrot.slane %v321_v13, %v328_v8  ;;  %v333_v31 = vrot.slane %v321_v13, %v332_v14 }
  0x12   : > { %v337_v32 = vrot.slane %v321_v13, %v336_v15 }
  0x13   : > { %vm338_vm1 = vcmp.eq.s32.totalorder %v325_v21, 1  ;;  %vm339_vm2 = vcmp.eq.s32.totalorder %v329_v22, 1  ;;  %vm340_vm3 = vcmp.eq.s32.totalorder %v333_v31, 1 }
  0x14   : > { %vm341_vm4 = vcmp.eq.s32.totalorder %v337_v32, 1 }
  0x88   : > { %v291_v9 = vpop.permute.xlu0 %290 }
  0x89   : > { %v293_v16 = vmul.f32 %v291_v9, %v283_v6  ;;  %v294_v17 = vmul.f32 %v291_v9, %v284_v10  ;;  %v295_v18 = vmul.f32 %v291_v9, %v285_v11  ;;  %v296_v19 = vmul.f32 %v291_v9, %v286_v12 }
  0x8c   : > { %v301_v23 = vpop.permute.xlu0 %300 }
  0x8d   : > { %v303_v27 = vadd.f32 %v301_v23, %v293_v16  ;;  %v304_v28 = vadd.f32 %v301_v23, %v294_v17  ;;  %v305_v29 = vadd.f32 %v301_v23, %v295_v18  ;;  %v306_v30 = vadd.f32 %v301_v23, %v296_v19 }
  0x8f   : > { %v311_v33 = vadd.f32 %v307_v20, %v303_v27  ;;  %v312_v34 = vadd.f32 %v308_v24, %v304_v28  ;;  %v313_v35 = vadd.f32 %v309_v25, %v305_v29  ;;  %v314_v36 = vadd.f32 %v310_v26, %v306_v30 }
  0x91   : > { %v315_v37 = vmax.f32 %v311_v33, 0.0  ;;  %v316_v38 = vmax.f32 %v312_v34, 0.0  ;;  %v317_v39 = vmax.f32 %v313_v35, 0.0  ;;  %v318_v40 = vmax.f32 %v314_v36, 0.0 }
  0x93   : > { %v342_v41 = vsel %vm338_vm1, %v315_v37, 0.0  ;;  %v343_v42 = vsel %vm339_vm2, %v316_v38, 0.0  ;;  %v344_v43 = vsel %vm340_vm3, %v317_v39, 0.0  ;;  %v345_v44 = vsel %vm341_vm4, %v318_v40, 0.0 }
  0x94   : > { %346 = vst [vmem:[%s281_s14] sm:$0xff] %v342_v41  ;;  %347 = vst [vmem:[%s281_s14 + $0x8] sm:$0xff] %v343_v42 }
  0x95   : > { %348 = vst [vmem:[%s281_s14 + $0x10] sm:$0xff] %v344_v43  ;;  %349 = vst [vmem:[%s281_s14 + $0x18] sm:$0xff] %v345_v44 }
  0x96 PF: > { %s15_s18 = sadd.s32 1, %s461_s18  }
  0x97   : > { %p12_p5 = scmp.ge.s32.totalorder %s15_s18, 4  }
  0x99   :  { %14 = sbr.rel (!%p12_p5) target bundleno = 1 (0x1), region = 76 }

// kernel: basic_block_forward.3
= control target key start
LH: loop header
LB: loop body
LE: loop exit
PB: predicated region body
PF: predicated region fallthrough
CT: control target
= control target key end

     0   :  { %s1066_s21 = smov 0   ;;  %s1289_s0 = inlined_call_operand.vmem [shape: f32[8,2048], index: 0, kind: input, shape index: {}, may-alias: {0,1,2}]   ;;  %s1290_s1 = inlined_call_operand.vmem [shape: f32[8,2048], index: 1, kind: input, shape index: {}, may-alias: {0,1,2}]   ;;  %s1291_s2 = inlined_call_operand.vmem [shape: f32[8,2048], index: 2, kind: input, shape index: {}, may-alias: {0,1,2}]   ;;  %s1292_s3 = inlined_call_operand.vmem [shape: f32[8,72], index: 3, kind: input, shape index: {}]   ;;  %s1293_s4 = inlined_call_operand.vmem [shape: f32[1,2048], index: 4, kind: input, shape index: {}]   ;;  %s1294_s5 = inlined_call_operand.vmem [shape: f32[8,2048], index: 5, kind: output, shape index: {0}]   ;;  %s1295_s6 = inlined_call_operand.vmem [shape: f32[2,8,2], index: 6, kind: output, shape index: {1}]  }
   0x1 LB: > { %s1072_s22 = sadd.s32 4294967295, %s1018_s21   ;;  %p970_p0 = scmp.ge.s32.totalorder %s1018_s21, 1  ;;  %s1018_s21 = sphi %s1066_s21, %s17_s21  }
   0x2   : > { %p262_p1 = scmp.lt.s32.totalorder %s1018_s21, 3 }
   0x4   : > { %p263_p2 = pnand %p970_p0, %p262_p1 }
   0x5   : > { %s1077_s23 = sshll.u32 (!%p263_p2), %s1072_s22, 2  ;;  %s1020_s29 = smov (!%p263_p2), 90  }
   0x6   : > { %266 = sbr.rel (%p263_p2) target bundleno = 700 (0x2bc), region = 40  ;;  %s986_s24 = sadd.s32 (!%p263_p2), 4, %s1077_s23 }
   0x7   : > { %p322_p3 = scmp.lt.s32.totalorder (!%p263_p2), %s986_s24, 15  ;;  %s988_s30 = sadd.s32 (!%p263_p2), 8, %s1077_s23 }
   0x8   : > { %p330_p4 = scmp.lt.s32.totalorder (!%p263_p2), %s988_s30, 15  ;;  %s1021_s7 = smov (!%p263_p2), 91  }
   0x9   : > { %s1022_s9 = smov (!%p263_p2), 92   ;;  %s1023_s13 = smov (!%p263_p2), 108  }
   0xa   : > { %s1024_s14 = smov (!%p263_p2), 109   ;;  %p315_p5 = scmp.lt.s32.totalorder (!%p263_p2), %s1077_s23, 15 }
   0xb   : > { %s1297_s24 = smov (!%p322_p3, %s986_s24), 15  ;;  %s1299_s30 = smov (!%p330_p4, %s988_s30), 15  ;;  %vm480_vm0 = vcmask 736256   ;;  %vm465_vm1 = vcmask 744448   ;;  %vm450_vm2 = vcmask 752640   ;;  %vm435_vm3 = vcmask 883712  }
   0xc   : > { %s974_s25 = sshll.u32 %s1297_s24, 3  ;;  %s976_s8 = sshll.u32 %s1299_s30, 3  ;;  %vm420_vm4 = vcmask 891904   ;;  %vm407_vm5 = vcmask 900096   ;;  %vm392_vm6 = vcmask 1031168   ;;  %vm377_vm7 = vcmask 1039360  }
   0xd   : > { %s325_s28 = scalar_lea.vmem %s1290_s1, %s974_s25  ;;  %s333_s12 = scalar_lea.vmem %s1291_s2, %s976_s8  ;;  %vm575_vm8 = vcmask 154624   ;;  %vm648_vm9 = vcmask 588800   ;;  %vm839_vm15 = vcmask 7168  }
   0xe   : > { %v1088_v0 = vld [vmem:[%s325_s28 + $0x10] sm:$0xff]  ;;  %v1090_v1 = vld [vmem:[%s325_s28] sm:$0xff]  ;;  %v1095_v2 = vld [vmem:[%s325_s28 + $0x8] sm:$0xff]  ;;  %s1301_s23 = smov (!%p315_p5, %s1077_s23), 15  ;;  %s1025_s15 = smov 110  }
   0xf   : > { %474 = vrot.lane.b32.xlu1 %v1088_v0, %s1020_s29  ;;  %470 = vrot.lane.b32.xlu0 %v1090_v1, %s1020_s29  ;;  %v1103_v3 = vld [vmem:[%s325_s28 + $0x18] sm:$0xff]  ;;  %v360_v4 = vld [vmem:[%s333_s12] sm:$0xff]  ;;  %s972_s16 = sshll.u32 %s1301_s23, 3  ;;  %s1026_s20 = smov 126  }
  0x10   : > { %s318_s19 = scalar_lea.vmem %s1289_s0, %s972_s16  ;;  %s1027_s23 = smov 127  }
  0x11   : > { %v1127_v5 = vld [vmem:[%s318_s19 + $0x18] sm:$0xff]  ;;  %s1028_s26 = smov 19   ;;  %s348_s10 = scalar_lea.vmem %s1294_s5, %s974_s25 }
  0x12   : > { %p351_p6 = scmp.lt.s32.totalorder %s1072_s22, 1 }
  0x13   : > { %455 = vrot.lane.b32.xlu1 %v1090_v1, %s1021_s7  ;;  %472 = vrot.lane.b32.xlu0 %v1095_v2, %s1020_s29 }
  0x14   : > { %s1303_s22 = smov (!%p351_p6, %s1072_s22), 1 }
  0x17   : > { %459 = vrot.lane.b32.xlu1 %v1088_v0, %s1021_s7  ;;  %457 = vrot.lane.b32.xlu0 %v1095_v2, %s1021_s7 }
  0x1b   : > { %442 = vrot.lane.b32.xlu1 %v1095_v2, %s1022_s9  ;;  %440 = vrot.lane.b32.xlu0 %v1090_v1, %s1022_s9 }
  0x1f   : > { %476 = vrot.lane.b32.xlu1 %v1103_v3, %s1020_s29  ;;  %444 = vrot.lane.b32.xlu0 %v1088_v0, %s1022_s9 }
  0x23   : > { %425 = vrot.lane.b32.xlu1 %v1090_v1, %s1023_s13  ;;  %478 = vrot.lane.b32.xlu0 %v360_v4, %s1020_s29 }
  0x27   : > { %429 = vrot.lane.b32.xlu1 %v1088_v0, %s1023_s13  ;;  %427 = vrot.lane.b32.xlu0 %v1095_v2, %s1023_s13 }
  0x2b   : > { %463 = vrot.lane.b32.xlu1 %v360_v4, %s1021_s7  ;;  %461 = vrot.lane.b32.xlu0 %v1103_v3, %s1021_s7  ;;  %s340_s7 = scalar_lea.vmem %s1293_s4, %s1297_s24  ;;  %s980_s24 = sshll.u32 %s1303_s22, 3 }
  0x2c   : > { %s354_s12 = scalar_lea.vmem %s1295_s6, %s980_s24 }
  0x2f   : > { %414 = vrot.lane.b32.xlu1 %v1095_v2, %s1024_s14  ;;  %412 = vrot.lane.b32.xlu0 %v1090_v1, %s1024_s14 }
  0x33   : > { %446 = vrot.lane.b32.xlu1 %v1103_v3, %s1022_s9  ;;  %416 = vrot.lane.b32.xlu0 %v1088_v0, %s1024_s14 }
  0x37   : > { %399 = vrot.lane.b32.xlu1 %v1090_v1, %s1025_s15  ;;  %448 = vrot.lane.b32.xlu0 %v360_v4, %s1022_s9 }
  0x3b   : > { %403 = vrot.lane.b32.xlu1 %v1088_v0, %s1025_s15  ;;  %401 = vrot.lane.b32.xlu0 %v1095_v2, %s1025_s15 }
  0x3f   : > { %433 = vrot.lane.b32.xlu1 %v360_v4, %s1023_s13  ;;  %431 = vrot.lane.b32.xlu0 %v1103_v3, %s1023_s13 }
  0x43   : > { %384 = vrot.lane.b32.xlu1 %v1090_v1, %s1026_s20  ;;  %397 = vrot.lane.b32.xlu0 %v1127_v5, %s1025_s15 }
  0x47   : > { %388 = vrot.lane.b32.xlu1 %v1088_v0, %s1026_s20  ;;  %386 = vrot.lane.b32.xlu0 %v1095_v2, %s1026_s20 }
  0x4b   : > { %382 = vrot.lane.b32.xlu1 %v1127_v5, %s1026_s20  ;;  %418 = vrot.lane.b32.xlu0 %v1103_v3, %s1024_s14 }
  0x4f   : > { %371 = vrot.lane.b32.xlu1 %v1095_v2, %s1027_s23  ;;  %369 = vrot.lane.b32.xlu0 %v1090_v1, %s1027_s23 }
  0x53   : > { %405 = vrot.lane.b32.xlu1 %v1103_v3, %s1025_s15  ;;  %373 = vrot.lane.b32.xlu0 %v1088_v0, %s1027_s23 }
  0x57   : > { %390 = vrot.lane.b32.xlu1 %v1103_v3, %s1026_s20  ;;  %367 = vrot.lane.b32.xlu0 %v1127_v5, %s1027_s23 }
  0x5b   : > { %375 = vrot.lane.b32.xlu0 %v1103_v3, %s1027_s23 }
  0x81   : > { %v475_v6 = vpop.permute.xlu1 %474  ;;  %v471_v7 = vpop.permute.xlu0 %470 }
  0x82   : > { %565 = vrot.lane.b32.xlu1 %v471_v7, %s1028_s26 }
  0x85   : > { %v456_v8 = vpop.permute.xlu1 %455  ;;  %v473_v9 = vpop.permute.xlu0 %472 }
  0x86   : > { %555 = vrot.lane.b32.xlu0 %v456_v8, %s1028_s26  ;;  %v482_v20 = vsel %vm480_vm0, %v473_v9, %v475_v6  ;;  %v481_v29 = vsel %vm480_vm0, %v471_v7, %v473_v9 }
  0x89   : > { %v460_v10 = vpop.permute.xlu1 %459  ;;  %v458_v11 = vpop.permute.xlu0 %457 }
  0x8a   : > { %v466_v23 = vsel %vm465_vm1, %v456_v8, %v458_v11  ;;  %v467_v33 = vsel %vm465_vm1, %v458_v11, %v460_v10 }
  0x8d   : > { %v443_v12 = vpop.permute.xlu1 %442  ;;  %v441_v13 = vpop.permute.xlu0 %440 }
  0x8e   : > { %545 = vrot.lane.b32.xlu1 %v441_v13, %s1028_s26  ;;  %v451_v37 = vsel %vm450_vm2, %v441_v13, %v443_v12 }
  0x91   : > { %v477_v14 = vpop.permute.xlu1 %476  ;;  %v1145_v15 = vpop.permute.xlu0 %444 }
  0x92   : > { %v452_v26 = vsel %vm450_vm2, %v443_v12, %v1145_v15  ;;  %v483_v42 = vsel %vm480_vm0, %v475_v6, %v477_v14 }
  0x95   : > { %v426_v16 = vpop.permute.xlu1 %425  ;;  %v479_v17 = vpop.permute.xlu0 %478 }
  0x96   : > { %535 = vrot.lane.b32.xlu0 %v426_v16, %s1028_s26  ;;  %v484_v30 = vsel %vm480_vm0, %v477_v14, %v479_v17  ;;  %vm841_vm0 = vcmask 15360  }
  0x99   : > { %v430_v18 = vpop.permute.xlu1 %429  ;;  %v428_v19 = vpop.permute.xlu0 %427 }
  0x9a   : > { %569 = vrot.lane.b32.xlu0 %v482_v20, %s1028_s26  ;;  %v436_v34 = vsel %vm435_vm3, %v426_v16, %v428_v19  ;;  %v437_v45 = vsel %vm435_vm3, %v428_v19, %v430_v18  ;;  %v1029_v16 = vmov 0.0  }
  0x9b   : > { %716 = vmatprep.mubr.f32.mxu0 %v1029_v16  ;;  %787 = vmatprep.mubr.f32.mxu1 %v1029_v16 }
  0x9d   : > { %v464_v21 = vpop.permute.xlu1 %463  ;;  %v462_v22 = vpop.permute.xlu0 %461 }
  0x9e   : > { %557 = vrot.lane.b32.xlu0 %v466_v23, %s1028_s26  ;;  %v468_v38 = vsel %vm465_vm1, %v460_v10, %v462_v22  ;;  %v469_v48 = vsel %vm465_vm1, %v462_v22, %v464_v21 }
  0xa1   : > { %v415_v24 = vpop.permute.xlu1 %414  ;;  %v413_v25 = vpop.permute.xlu0 %412 }
  0xa2   : > { %525 = vrot.lane.b32.xlu1 %v413_v25, %s1028_s26  ;;  %549 = vrot.lane.b32.xlu0 %v452_v26, %s1028_s26  ;;  %v421_v51 = vsel %vm420_vm4, %v413_v25, %v415_v24 }
  0xa5   : > { %v447_v27 = vpop.permute.xlu1 %446  ;;  %v1156_v28 = vpop.permute.xlu0 %416 }
  0xa6   : > { %567 = vrot.lane.b32.xlu1 %v481_v29, %s1028_s26  ;;  %573 = vrot.lane.b32.xlu0 %v484_v30, %s1028_s26  ;;  %v422_v39 = vsel %vm420_vm4, %v415_v24, %v1156_v28  ;;  %v453_v55 = vsel %vm450_vm2, %v1145_v15, %v447_v27 }
  0xa9   : > { %v400_v31 = vpop.permute.xlu1 %399  ;;  %v449_v32 = vpop.permute.xlu0 %448 }
  0xaa   : > { %559 = vrot.lane.b32.xlu1 %v467_v33, %s1028_s26  ;;  %537 = vrot.lane.b32.xlu0 %v436_v34, %s1028_s26  ;;  %v454_v43 = vsel %vm450_vm2, %v447_v27, %v449_v32 }
  0xad   : > { %v404_v35 = vpop.permute.xlu1 %403  ;;  %v402_v36 = vpop.permute.xlu0 %401 }
  0xae   : > { %547 = vrot.lane.b32.xlu1 %v451_v37, %s1028_s26  ;;  %561 = vrot.lane.b32.xlu0 %v468_v38, %s1028_s26  ;;  %v409_v47 = vsel %vm407_vm5, %v400_v31, %v402_v36  ;;  %v410_v59 = vsel %vm407_vm5, %v402_v36, %v404_v35 }
  0xb1   : > { %v434_v40 = vpop.permute.xlu1 %433  ;;  %v432_v41 = vpop.permute.xlu0 %431 }
  0xb2   : > { %571 = vrot.lane.b32.xlu1 %v483_v42, %s1028_s26  ;;  %529 = vrot.lane.b32.xlu0 %v422_v39, %s1028_s26  ;;  %v438_v52 = vsel %vm435_vm3, %v430_v18, %v432_v41  ;;  %v439_v61 = vsel %vm435_vm3, %v432_v41, %v434_v40 }
  0xb5   : > { %v398_v44 = vpop.permute.xlu0 %397  ;;  %v385_v46 = vpop.permute.xlu1 %384 }
  0xb6   : > { %539 = vrot.lane.b32.xlu1 %v437_v45, %s1028_s26  ;;  %553 = vrot.lane.b32.xlu0 %v454_v43, %s1028_s26  ;;  %v408_v53 = vsel %vm407_vm5, %v398_v44, %v400_v31 }
  0xb9   : > { %v387_v49 = vpop.permute.xlu0 %386  ;;  %v389_v50 = vpop.permute.xlu1 %388 }
  0xba   : > { %563 = vrot.lane.b32.xlu1 %v469_v48, %s1028_s26  ;;  %517 = vrot.lane.b32.xlu0 %v409_v47, %s1028_s26  ;;  %v395_v57 = vsel %vm392_vm6, %v387_v49, %v389_v50  ;;  %v394_v63 = vsel %vm392_vm6, %v385_v46, %v387_v49 }
  0xbd   : > { %v419_v54 = vpop.permute.xlu0 %418  ;;  %v383_v56 = vpop.permute.xlu1 %382 }
  0xbe   : > { %527 = vrot.lane.b32.xlu1 %v421_v51, %s1028_s26  ;;  %541 = vrot.lane.b32.xlu0 %v438_v52, %s1028_s26  ;;  %v423_v8 = vsel %vm420_vm4, %v1156_v28, %v419_v54  ;;  %v393_v11 = vsel %vm392_vm6, %v383_v56, %v385_v46 }
  0xc1   : > { %v370_v58 = vpop.permute.xlu0 %369  ;;  %v372_v60 = vpop.permute.xlu1 %371 }
  0xc2   : > { %551 = vrot.lane.b32.xlu1 %v453_v55, %s1028_s26  ;;  %515 = vrot.lane.b32.xlu0 %v408_v53, %s1028_s26  ;;  %v379_v4 = vsel %vm377_vm7, %v370_v58, %v372_v60 }
  0xc5   : > { %v374_v62 = vpop.permute.xlu0 %373  ;;  %v406_v6 = vpop.permute.xlu1 %405 }
  0xc6   : > { %519 = vrot.lane.b32.xlu1 %v410_v59, %s1028_s26  ;;  %509 = vrot.lane.b32.xlu0 %v395_v57, %s1028_s26  ;;  %v411_v9 = vsel %vm407_vm5, %v404_v35, %v406_v6  ;;  %v380_v12 = vsel %vm377_vm7, %v372_v60, %v374_v62 }
  0xc9   : > { %v368_v7 = vpop.permute.xlu0 %367  ;;  %v391_v13 = vpop.permute.xlu1 %390 }
  0xca   : > { %543 = vrot.lane.b32.xlu1 %v439_v61, %s1028_s26  ;;  %533 = vrot.lane.b32.xlu0 %v419_v54, %s1028_s26  ;;  %v378_v10 = vsel %vm377_vm7, %v368_v7, %v370_v58  ;;  %v396_v17 = vsel %vm392_vm6, %v389_v50, %v391_v13 }
  0xcd   : > { %v376_v14 = vpop.permute.xlu0 %375 }
  0xce   : > { %507 = vrot.lane.b32.xlu1 %v394_v63, %s1028_s26  ;;  %497 = vrot.lane.b32.xlu0 %v379_v4, %s1028_s26  ;;  %v381_v15 = vsel %vm377_vm7, %v374_v62, %v376_v14 }
  0xd2   : > { %531 = vrot.lane.b32.xlu1 %v423_v8, %s1028_s26  ;;  %521 = vrot.lane.b32.xlu0 %v411_v9, %s1028_s26 }
  0xd6   : > { %505 = vrot.lane.b32.xlu1 %v393_v11, %s1028_s26  ;;  %495 = vrot.lane.b32.xlu0 %v378_v10, %s1028_s26 }
  0xda   : > { %499 = vrot.lane.b32.xlu1 %v380_v12, %s1028_s26  ;;  %489 = vrot.lane.b32.xlu0 %v1095_v2, %s1028_s26 }
  0xde   : > { %523 = vrot.lane.b32.xlu1 %v406_v6, %s1028_s26  ;;  %513 = vrot.lane.b32.xlu0 %v391_v13, %s1028_s26 }
  0xe2   : > { %487 = vrot.lane.b32.xlu1 %v1090_v1, %s1028_s26  ;;  %501 = vrot.lane.b32.xlu0 %v381_v15, %s1028_s26 }
  0xe6   : > { %511 = vrot.lane.b32.xlu1 %v396_v17, %s1028_s26  ;;  %491 = vrot.lane.b32.xlu0 %v1088_v0, %s1028_s26 }
  0xea   : > { %485 = vrot.lane.b32.xlu1 %v1127_v5, %s1028_s26 }
  0xee   : > { %503 = vrot.lane.b32.xlu1 %v376_v14, %s1028_s26 }
  0xf2   : > { %493 = vrot.lane.b32.xlu1 %v1103_v3, %s1028_s26 }
  0xf4   : > { %v566_v1 = vpop.permute.xlu1 %565 }
  0xf8   : > { %v556_v2 = vpop.permute.xlu0 %555 }
 0x100   : > { %v546_v20 = vpop.permute.xlu1 %545 }
 0x108   : > { %v536_v18 = vpop.permute.xlu0 %535 }
 0x10c   : > { %v570_v19 = vpop.permute.xlu0 %569 }
 0x110   : > { %v558_v21 = vpop.permute.xlu0 %557 }
 0x111   : > { %v604_v28 = vsel %vm575_vm8, %v556_v2, %v558_v21 }
 0x114   : > { %v526_v22 = vpop.permute.xlu1 %525  ;;  %v550_v23 = vpop.permute.xlu0 %549 }
 0x118   : > { %v568_v24 = vpop.permute.xlu1 %567  ;;  %v574_v25 = vpop.permute.xlu0 %573 }
 0x119   : > { %v609_v0 = vsel %vm575_vm8, %v568_v24, %v570_v19  ;;  %v608_v5 = vsel %vm575_vm8, %v566_v1, %v568_v24  ;;  %v361_v24 = vld [vmem:[%s1292_s3] sm:$0xff] }
 0x11a   : > { %666 = vmatprep.subr.mxu0 %v609_v0 }
 0x11b   : > { %667 = vmatpush1.msra.mxu0 %v608_v5 }
 0x11c   : > { %v560_v26 = vpop.permute.xlu1 %559  ;;  %v538_v27 = vpop.permute.xlu0 %537 }
 0x11d   : > { %v605_v3 = vsel %vm575_vm8, %v558_v21, %v560_v26  ;;  %v596_v40 = vsel %vm575_vm8, %v536_v18, %v538_v27 }
 0x11e   : > { %668 = vmatprep.subr.mxu0 %v605_v3 }
 0x11f   : > { %669 = vmatpush1.msra.mxu0 %v604_v28 }
 0x120   : > { %v548_v29 = vpop.permute.xlu1 %547  ;;  %v562_v30 = vpop.permute.xlu0 %561 }
 0x121   : > { %v601_v31 = vsel %vm575_vm8, %v548_v29, %v550_v23  ;;  %v600_v32 = vsel %vm575_vm8, %v546_v20, %v548_v29  ;;  %v606_v44 = vsel %vm575_vm8, %v560_v26, %v562_v30 }
 0x122   : > { %670 = vmatprep.subr.mxu0 %v601_v31  ;;  %v801_v31 = vlaneseq }
 0x123   : > { %671 = vmatpush1.msra.mxu0 %v600_v32  ;;  %v798_v32 = vld [vmem:[%s340_s7] sm:$0xf] }
 0x124   : > { %v572_v33 = vpop.permute.xlu1 %571  ;;  %v530_v34 = vpop.permute.xlu0 %529  ;;  %vm799_vm10 = vcmp.gt.f32.partialorder %v798_v32, 0.5 }
 0x125   : > { %v611_v35 = vsel %vm575_vm8, %v572_v33, %v574_v25  ;;  %v610_v36 = vsel %vm575_vm8, %v570_v19, %v572_v33  ;;  %v802_v33 = vshrl.u32 %v801_v31, 7 }
 0x126   : > { %737 = vmatprep.subr.mxu1 %v611_v35 }
 0x127   : > { %738 = vmatpush1.msra.mxu1 %v610_v36  ;;  %v807_v35 = vsub.s32 1, %v802_v33  ;;  %v1030_v36 = vmov 0  }
 0x128   : > { %v540_v37 = vpop.permute.xlu1 %539  ;;  %v554_v38 = vpop.permute.xlu0 %553 }
 0x129   : > { %v597_v39 = vsel %vm575_vm8, %v538_v27, %v540_v37 }
 0x12a   : > { %672 = vmatprep.subr.mxu0 %v597_v39 }
 0x12b   : > { %673 = vmatpush1.msra.mxu0 %v596_v40  ;;  %v811_v40 = vsub.s32 2, %v802_v33 }
 0x12c   : > { %v564_v41 = vpop.permute.xlu1 %563  ;;  %v518_v42 = vpop.permute.xlu0 %517 }
 0x12d   : > { %v607_v43 = vsel %vm575_vm8, %v562_v30, %v564_v41 }
 0x12e   : > { %739 = vmatprep.subr.mxu1 %v607_v43 }
 0x12f   : > { %740 = vmatpush1.msra.mxu1 %v606_v44 }
 0x130   : > { %v528_v45 = vpop.permute.xlu1 %527  ;;  %v542_v46 = vpop.permute.xlu0 %541 }
 0x131   : > { %v593_v47 = vsel %vm575_vm8, %v528_v45, %v530_v34  ;;  %v592_v48 = vsel %vm575_vm8, %v526_v22, %v528_v45  ;;  %v598_v60 = vsel %vm575_vm8, %v540_v37, %v542_v46  ;;  %v800_v37 = vsel %vm799_vm10, 1, %v1030_v36 }
 0x132   : > { %674 = vmatprep.subr.mxu0 %v593_v47  ;;  %v808_v39 = vrot.slane %v800_v37, %v807_v35  ;;  %v812_v44 = vrot.slane %v800_v37, %v811_v40 }
 0x133   : > { %675 = vmatpush1.msra.mxu0 %v592_v48 }
 0x134   : > { %v552_v49 = vpop.permute.xlu1 %551  ;;  %v516_v50 = vpop.permute.xlu0 %515  ;;  %vm818_vm12 = vcmp.eq.s32.totalorder %v808_v39, 1  ;;  %vm819_vm13 = vcmp.eq.s32.totalorder %v812_v44, 1 }
 0x135   : > { %v603_v51 = vsel %vm575_vm8, %v552_v49, %v554_v38  ;;  %v602_v52 = vsel %vm575_vm8, %v550_v23, %v552_v49  ;;  %v588_v56 = vsel %vm575_vm8, %v516_v50, %v518_v42 }
 0x136   : > { %741 = vmatprep.subr.mxu1 %v603_v51 }
 0x137   : > { %742 = vmatpush1.msra.mxu1 %v602_v52 }
 0x138   : > { %v520_v53 = vpop.permute.xlu1 %519  ;;  %v510_v54 = vpop.permute.xlu0 %509 }
 0x139   : > { %v589_v55 = vsel %vm575_vm8, %v518_v42, %v520_v53  ;;  %v815_v42 = vsub.s32 3, %v802_v33 }
 0x13a   : > { %676 = vmatprep.subr.mxu0 %v589_v55 }
 0x13b   : > { %677 = vmatpush1.msra.mxu0 %v588_v56  ;;  %v816_v47 = vrot.slane %v800_v37, %v815_v42 }
 0x13c   : > { %v544_v57 = vpop.permute.xlu1 %543  ;;  %v534_v58 = vpop.permute.xlu0 %533 }
 0x13d   : > { %v599_v59 = vsel %vm575_vm8, %v542_v46, %v544_v57  ;;  %vm820_vm14 = vcmp.eq.s32.totalorder %v816_v47, 1 }
 0x13e   : > { %743 = vmatprep.subr.mxu1 %v599_v59 }
 0x13f   : > { %744 = vmatpush1.msra.mxu1 %v598_v60 }
 0x140   : > { %v508_v61 = vpop.permute.xlu1 %507  ;;  %v498_v62 = vpop.permute.xlu0 %497 }
 0x141   : > { %v585_v63 = vsel %vm575_vm8, %v508_v61, %v510_v54 }
 0x142   : > { %678 = vmatprep.subr.mxu0 %v585_v63 }
 0x144   : > { %v532_v4 = vpop.permute.xlu1 %531  ;;  %v522_v6 = vpop.permute.xlu0 %521 }
 0x145   : > { %v595_v7 = vsel %vm575_vm8, %v532_v4, %v534_v58  ;;  %v594_v8 = vsel %vm575_vm8, %v530_v34, %v532_v4  ;;  %v590_v2 = vsel %vm575_vm8, %v520_v53, %v522_v6  ;;  %v803_v34 = vsub.s32 0, %v802_v33 }
 0x146   : > { %745 = vmatprep.subr.mxu1 %v595_v7 }
 0x147   : > { %746 = vmatpush1.msra.mxu1 %v594_v8  ;;  %v804_v38 = vrot.slane %v800_v37, %v803_v34 }
 0x148   : > { %v506_v9 = vpop.permute.xlu1 %505  ;;  %v496_v11 = vpop.permute.xlu0 %495 }
 0x149   : > { %v584_v10 = vsel %vm575_vm8, %v506_v9, %v508_v61  ;;  %v580_v14 = vsel %vm575_vm8, %v496_v11, %v498_v62  ;;  %vm817_vm11 = vcmp.eq.s32.totalorder %v804_v38, 1 }
 0x14a   : > { %679 = vmatpush1.msra.mxu0 %v584_v10 }
 0x14c   : > { %v500_v12 = vpop.permute.xlu1 %499  ;;  %v490_v16 = vpop.permute.xlu0 %489 }
 0x14d   : > { %v581_v13 = vsel %vm575_vm8, %v498_v62, %v500_v12 }
 0x14e   : > { %680 = vmatprep.subr.mxu0 %v581_v13 }
 0x14f   : > { %681 = vmatpush1.msra.mxu0 %v580_v14 }
 0x150   : > { %v524_v15 = vpop.permute.xlu1 %523  ;;  %v514_v19 = vpop.permute.xlu0 %513 }
 0x151   : > { %v591_v17 = vsel %vm575_vm8, %v522_v6, %v524_v15 }
 0x152   : > { %747 = vmatprep.subr.mxu1 %v591_v17 }
 0x153   : > { %748 = vmatpush1.msra.mxu1 %v590_v2 }
 0x154   : > { %v488_v18 = vpop.permute.xlu1 %487  ;;  %v502_v25 = vpop.permute.xlu0 %501 }
 0x155   : > { %v577_v1 = vsel %vm575_vm8, %v488_v18, %v490_v16  ;;  %v582_v27 = vsel %vm575_vm8, %v500_v12, %v502_v25 }
 0x156   : > { %682 = vmatprep.subr.mxu0 %v577_v1 }
 0x158   : > { %v512_v20 = vpop.permute.xlu1 %511  ;;  %v492_v3 = vpop.permute.xlu0 %491 }
 0x159   : > { %v587_v21 = vsel %vm575_vm8, %v512_v20, %v514_v19  ;;  %v586_v22 = vsel %vm575_vm8, %v510_v54, %v512_v20  ;;  %v578_v30 = vsel %vm575_vm8, %v490_v16, %v492_v3 }
 0x15a   : > { %749 = vmatprep.subr.mxu1 %v587_v21 }
 0x15b   : > { %750 = vmatpush1.msra.mxu1 %v586_v22 }
 0x15c   : > { %v486_v23 = vpop.permute.xlu1 %485 }
 0x15d   : > { %v576_v0 = vsel %vm575_vm8, %v486_v23, %v488_v18 }
 0x15e   : > { %683 = vmatpush1.msra.mxu0 %v576_v0 }
 0x15f   : > { %981 = vmatmul.mubr.msk.f32.vlgmr.msra.gmra.mxu0 %vm648_vm9, %v361_v24 }
 0x160   : > { %v504_v5 = vpop.permute.xlu1 %503 }
 0x161   : > { %v583_v26 = vsel %vm575_vm8, %v502_v25, %v504_v5 }
 0x162   : > { %751 = vmatprep.subr.mxu1 %v583_v26 }
 0x163   : > { %752 = vmatpush1.msra.mxu1 %v582_v27 }
 0x164   : > { %v494_v28 = vpop.permute.xlu1 %493 }
 0x165   : > { %v579_v29 = vsel %vm575_vm8, %v492_v3, %v494_v28 }
 0x166   : > { %753 = vmatprep.subr.mxu1 %v579_v29 }
 0x167   : > { %754 = vmatpush1.msra.mxu1 %v578_v30 }
 0x168   : > { %982 = vmatmul.mubr.msk.f32.vlgmr.msra.gmra.mxu1 %vm648_vm9, %v361_v24 }
 0x21f   : > { %v718_v41 = vpop.f32.mrf.mxu0 }
 0x220   : > { %794 = vst [vmem:[%s348_s10] sm:$0xff] %v718_v41  ;;  %v821_v45 = vsel %vm817_vm11, %v718_v41, 0.0 }
 0x221   : > { %v720_v43 = vpop.f32.mrf.mxu0  ;;  %v830_v48 = vmul.f32 %v821_v45, %v821_v45 }
 0x222   : > { %795 = vst [vmem:[%s348_s10 + $0x8] sm:$0xff] %v720_v43  ;;  %v822_v46 = vsel %vm818_vm12, %v720_v43, 0.0 }
 0x223   : > { %v831_v49 = vmul.f32 %v822_v46, %v822_v46  ;;  %v825_v50 = vadd.f32 %v822_v46, %v821_v45 }
 0x225   : > { %v834_v53 = vadd.f32 %v831_v49, %v830_v48 }
 0x228   : > { %v789_v51 = vpop.f32.mrf.mxu1 }
 0x229   : > { %796 = vst [vmem:[%s348_s10 + $0x10] sm:$0xff] %v789_v51  ;;  %v823_v52 = vsel %vm819_vm13, %v789_v51, 0.0 }
 0x22a   : > { %v826_v54 = vadd.f32 %v825_v50, %v823_v52  ;;  %v832_v55 = vmul.f32 %v823_v52, %v823_v52  ;;  %v791_v56 = vpop.f32.mrf.mxu1 }
 0x22b   : > { %797 = vst [vmem:[%s348_s10 + $0x18] sm:$0xff] %v791_v56  ;;  %v824_v57 = vsel %vm820_vm14, %v791_v56, 0.0 }
 0x22c   : > { %v833_v58 = vmul.f32 %v824_v57, %v824_v57  ;;  %v827_v59 = vadd.f32 %v826_v54, %v824_v57  ;;  %v835_v60 = vadd.f32 %v834_v53, %v832_v55 }
 0x22e   : > { %828 = vadd.xlane.f32.xlu0 %v827_v59  ;;  %v836_v61 = vadd.f32 %v835_v60, %v833_v58 }
 0x230   : > { %837 = vadd.xlane.f32.xlu1 %v836_v61 }
 0x2b7   : > { %v829_v62 = vpop.xlane.xlu0 %828 }
 0x2b9   : > { %v838_v63 = vpop.xlane.xlu1 %837 }
 0x2ba   : > { %v840_v4 = vsel %vm839_vm15, %v829_v62, %v838_v63 }
 0x2bb   : > { %842 = vst.msk [vmem:[%s354_s12] sm:$0xff] %vm841_vm0, %v840_v4 }
 0x2bc PF: > { %s17_s21 = sadd.s32 1, %s1018_s21  }
 0x2bd   : > { %p14_p7 = scmp.ge.s32.totalorder %s17_s21, 4  }
 0x2bf   :  { %16 = sbr.rel (!%p14_p7) target bundleno = 1 (0x1), region = 91 }

// kernel: basic_block_forward.4
= control target key start
LH: loop header
LB: loop body
LE: loop exit
PB: predicated region body
PF: predicated region fallthrough
CT: control target
= control target key end

     0   :  { %s1327_s13 = smov 0   ;;  %s1663_s0 = inlined_call_operand.vmem [shape: f32[8,2048], index: 0, kind: input, shape index: {}, may-alias: {0,1,2}]   ;;  %s1664_s1 = inlined_call_operand.vmem [shape: f32[8,2048], index: 1, kind: input, shape index: {}, may-alias: {0,1,2}]   ;;  %s1665_s2 = inlined_call_operand.vmem [shape: f32[8,2048], index: 2, kind: input, shape index: {}, may-alias: {0,1,2}]   ;;  %s1666_s3 = inlined_call_operand.vmem [shape: f32[8,1], index: 3, kind: input, shape index: {}]   ;;  %s1667_s4 = inlined_call_operand.vmem [shape: f32[8,1], index: 4, kind: input, shape index: {}]   ;;  %s1668_s5 = inlined_call_operand.vmem [shape: f32[1,2048], index: 5, kind: input, shape index: {}, may-alias: {5,6,7}]   ;;  %s1669_s6 = inlined_call_operand.vmem [shape: f32[1,2048], index: 6, kind: input, shape index: {}, may-alias: {5,6,7}]   ;;  %s1670_s7 = inlined_call_operand.vmem [shape: f32[1,2048], index: 7, kind: input, shape index: {}, may-alias: {5,6,7}]   ;;  %s1671_s8 = inlined_call_operand.vmem [shape: f32[8,72], index: 8, kind: input, shape index: {}]   ;;  %s1672_s9 = inlined_call_operand.vmem [shape: f32[8,1024], index: 9, kind: output, shape index: {0}]   ;;  %s1673_s10 = inlined_call_operand.vmem [shape: f32[2,8,2], index: 10, kind: output, shape index: {1}]  }
   0x1 LB: > { %s1333_s14 = sadd.s32 4294967295, %s1259_s13   ;;  %p1208_p0 = scmp.ge.s32.totalorder %s1259_s13, 1  ;;  %s1259_s13 = sphi %s1327_s13, %s21_s13  }
   0x2   : > { %p384_p1 = scmp.lt.s32.totalorder %s1259_s13, 3 }
   0x4   : > { %p385_p2 = pnand %p1208_p0, %p384_p1 }
   0x5   : > { %s1345_s19 = sshll.u32 (!%p385_p2), %s1333_s14, 2  ;;  %s1262_s18 = smov (!%p385_p2), 90  }
   0x6   : > { %388 = sbr.rel (%p385_p2) target bundleno = 863 (0x35f), region = 56  ;;  %s1226_s20 = sadd.s32 (!%p385_p2), 4, %s1345_s19 }
   0x7   : > { %p460_p3 = scmp.lt.s32.totalorder (!%p385_p2), %s1226_s20, 15  ;;  %s1228_s25 = sadd.s32 (!%p385_p2), 8, %s1345_s19 }
   0x8   : > { %p468_p4 = scmp.lt.s32.totalorder (!%p385_p2), %s1228_s25, 15  ;;  %s1264_s21 = smov (!%p385_p2), 92  }
   0x9   : > { %s1265_s22 = smov (!%p385_p2), 108   ;;  %p453_p5 = scmp.lt.s32.totalorder (!%p385_p2), %s1345_s19, 15 }
   0xa   : > { %s1267_s15 = smov (!%p385_p2), 110   ;;  %s1268_s16 = smov (!%p385_p2), 126  }
   0xb   : > { %v503_v0 = vld [vmem:[%s1666_s3] sm:$0xff]  ;;  %v1261_v1 = vmov 0   ;;  %s1675_s20 = smov (!%p460_p3, %s1226_s20), 15  ;;  %v522_v3 = vlaneseq  ;;  %s1677_s25 = smov (!%p468_p4, %s1228_s25), 15  ;;  %vm703_vm9 = vcmask 736256   ;;  %vm688_vm10 = vcmask 744448  }
   0xc   : > { %1252 = vset.pattern.permute.xlu0 %v1261_v1  ;;  %v504_v2 = vld [vmem:[%s1667_s4] sm:$0xff]  ;;  %s1351_s23 = scalar_lea.vmem %s1669_s6, %s1675_s20  ;;  %s1212_s24 = sshll.u32 %s1675_s20, 3  ;;  %vm673_vm11 = vcmask 752640   ;;  %vm658_vm12 = vcmask 883712   ;;  %vm643_vm13 = vcmask 891904   ;;  %vm630_vm14 = vcmask 900096  }
   0xd   : > { %508 = vperm.xlu0 %1252, %v503_v0   ;;  %v544_v4 = vld [vmem:[%s1351_s23] sm:$0xf]  ;;  %v1354_v5 = vshrl.u32 %v522_v3, 7  ;;  %s1360_s28 = scalar_lea.vmem %s1664_s1, %s1212_s24  ;;  %s1214_s29 = sshll.u32 %s1677_s25, 3  ;;  %vm798_vm15 = vcmask 154624  }
   0xe   : > { %vm545_vm0 = vcmp.gt.f32.partialorder %v544_v4, 0.5  ;;  %v528_v10 = vld [vmem:[%s1360_s28] sm:$0xff]  ;;  %v529_v11 = vld [vmem:[%s1360_s28 + $0x8] sm:$0xff]  ;;  %v530_v12 = vld [vmem:[%s1360_s28 + $0x10] sm:$0xff]  ;;  %s490_s12 = scalar_lea.vmem %s1670_s7, %s1677_s25  ;;  %s471_s17 = scalar_lea.vmem %s1665_s2, %s1214_s29 }
   0xf   : > { %v1363_v6 = vsub.s32 0, %v1354_v5  ;;  %v557_v7 = vsub.s32 2, %v1354_v5  ;;  %v546_v8 = vsel %vm545_vm0, 1, %v1261_v1  ;;  %v553_v13 = vsub.s32 1, %v1354_v5  ;;  %v575_v29 = vld [vmem:[%s490_s12] sm:$0xf] }
  0x10   : > { %v571_v30 = vld [vmem:[%s471_s17] sm:$0xff]  ;;  %vm576_vm4 = vcmp.gt.f32.partialorder %v575_v29, 0.5  ;;  %s1263_s20 = smov 91   ;;  %v531_v34 = vld [vmem:[%s1360_s28 + $0x18] sm:$0xff]  ;;  %v1411_v36 = vsub.s32 3, %v1354_v5  ;;  %s1266_s25 = smov 109  }
  0x11   : > { %514 = vperm.xlu0 %1252, %v504_v2   ;;  %v550_v14 = vrot.slane %v546_v8, %v1363_v6  ;;  %v558_v15 = vrot.slane %v546_v8, %v557_v7  ;;  %v554_v23 = vrot.slane %v546_v8, %v553_v13  ;;  %v577_v33 = vsel %vm576_vm4, 1, %v1261_v1  ;;  %s454_s24 = scalar_select %p453_p5, %s1345_s19, 15 }
  0x12   : > { %v581_v37 = vrot.slane %v577_v33, %v1363_v6  ;;  %v562_v41 = vrot.slane %v546_v8, %v1411_v36  ;;  %s1269_s17 = smov 127   ;;  %vm615_vm0 = vcmask 1031168   ;;  %p494_p6 = scmp.lt.s32.totalorder %s1345_s19, 7 }
  0x13   : > { %vm563_vm1 = vcmp.eq.s32.totalorder %v550_v14, 1  ;;  %vm565_vm2 = vcmp.eq.s32.totalorder %v558_v15, 1  ;;  %vm564_vm3 = vcmp.eq.s32.totalorder %v554_v23, 1  ;;  %s1210_s26 = sshll.u32 %s454_s24, 3  ;;  %s477_s29 = scalar_lea.vmem %s1668_s5, %s454_s24 }
  0x14   : > { %vm582_vm5 = vcmp.eq.s32.totalorder %v581_v37, 1  ;;  %vm566_vm6 = vcmp.eq.s32.totalorder %v562_v41, 1  ;;  %s456_s12 = scalar_lea.vmem %s1663_s0, %s1210_s26  ;;  %v519_v45 = vld [vmem:[%s477_s29] sm:$0xf]  ;;  %s1679_s19 = smov (!%p494_p6, %s1345_s19), 7 }
  0x15   : > { %v505_v46 = vld [vmem:[%s456_s12 + $0x18] sm:$0xff]  ;;  %vm520_vm7 = vcmp.gt.f32.partialorder %v519_v45, 0.5  ;;  %p499_p7 = scmp.lt.s32.totalorder %s1333_s14, 1 }
  0x16   : > { %v521_v48 = vsel %vm520_vm7, 1, %v1261_v1 }
  0x17   : > { %v525_v50 = vrot.slane %v521_v48, %v1411_v36  ;;  %s1681_s14 = smov (!%p499_p7, %s1333_s14), 1 }
  0x19   : > { %vm526_vm8 = vcmp.eq.s32.totalorder %v525_v50, 1 }
  0x88   : > { %v1367_v9 = vpop.permute.xlu0 %508 }
  0x89   : > { %v532_v16 = vmul.f32 %v528_v10, %v1367_v9  ;;  %v533_v17 = vmul.f32 %v529_v11, %v1367_v9  ;;  %v534_v18 = vmul.f32 %v530_v12, %v1367_v9  ;;  %v572_v32 = vmul.f32 %v571_v30, %v1367_v9 }
  0x8a   : > { %v535_v38 = vmul.f32 %v531_v34, %v1367_v9  ;;  %v511_v47 = vmul.f32 %v1367_v9, %v505_v46 }
  0x8c   : > { %v1379_v19 = vpop.permute.xlu0 %514 }
  0x8d   : > { %v536_v20 = vadd.f32 %v532_v16, %v1379_v19  ;;  %v537_v21 = vadd.f32 %v533_v17, %v1379_v19  ;;  %v538_v22 = vadd.f32 %v534_v18, %v1379_v19  ;;  %v573_v35 = vadd.f32 %v572_v32, %v1379_v19 }
  0x8e   : > { %v539_v39 = vadd.f32 %v535_v38, %v1379_v19  ;;  %v517_v49 = vadd.f32 %v1379_v19, %v511_v47 }
  0x8f   : > { %v540_v24 = vmax.f32 %v536_v20, 0.0  ;;  %v542_v25 = vmax.f32 %v538_v22, 0.0  ;;  %v541_v26 = vmax.f32 %v537_v21, 0.0  ;;  %v574_v40 = vmax.f32 %v573_v35, 0.0 }
  0x90   : > { %v543_v42 = vmax.f32 %v539_v39, 0.0  ;;  %v518_v51 = vmax.f32 %v517_v49, 0.0 }
  0x91   : > { %v1389_v27 = vsel %vm563_vm1, %v540_v24, 0.0  ;;  %v1391_v28 = vsel %vm565_vm2, %v542_v25, 0.0  ;;  %v1400_v31 = vsel %vm564_vm3, %v541_v26, 0.0  ;;  %v583_v43 = vsel %vm582_vm5, %v574_v40, 0.0 }
  0x92   : > { %697 = vrot.lane.b32.xlu0 %v1391_v28, %s1262_s18  ;;  %693 = vrot.lane.b32.xlu1 %v1389_v27, %s1262_s18  ;;  %v1428_v44 = vsel %vm566_vm6, %v543_v42, 0.0  ;;  %v527_v52 = vsel %vm526_vm8, %v518_v51, 0.0  ;;  %vm600_vm1 = vcmask 1039360   ;;  %vm871_vm2 = vcmask 588800  }
  0x93   : > { %vm1062_vm8 = vcmask 7168  }
  0x96   : > { %680 = vrot.lane.b32.xlu0 %v1400_v31, %s1263_s20  ;;  %695 = vrot.lane.b32.xlu1 %v1400_v31, %s1262_s18 }
  0x9a   : > { %663 = vrot.lane.b32.xlu0 %v1389_v27, %s1264_s21  ;;  %678 = vrot.lane.b32.xlu1 %v1389_v27, %s1263_s20 }
  0x9e   : > { %667 = vrot.lane.b32.xlu0 %v1391_v28, %s1264_s21  ;;  %682 = vrot.lane.b32.xlu1 %v1391_v28, %s1263_s20 }
  0xa2   : > { %701 = vrot.lane.b32.xlu0 %v583_v43, %s1262_s18  ;;  %665 = vrot.lane.b32.xlu1 %v1400_v31, %s1264_s21 }
  0xa6   : > { %650 = vrot.lane.b32.xlu0 %v1400_v31, %s1265_s22  ;;  %699 = vrot.lane.b32.xlu1 %v1428_v44, %s1262_s18  ;;  %s1270_s18 = smov 19  }
  0xaa   : > { %684 = vrot.lane.b32.xlu0 %v1428_v44, %s1263_s20  ;;  %648 = vrot.lane.b32.xlu1 %v1389_v27, %s1265_s22 }
  0xae   : > { %635 = vrot.lane.b32.xlu0 %v1389_v27, %s1266_s25  ;;  %652 = vrot.lane.b32.xlu1 %v1391_v28, %s1265_s22 }
  0xb2   : > { %639 = vrot.lane.b32.xlu0 %v1391_v28, %s1266_s25  ;;  %686 = vrot.lane.b32.xlu1 %v583_v43, %s1263_s20 }
  0xb6   : > { %671 = vrot.lane.b32.xlu0 %v583_v43, %s1264_s21  ;;  %637 = vrot.lane.b32.xlu1 %v1400_v31, %s1266_s25 }
  0xba   : > { %624 = vrot.lane.b32.xlu0 %v1400_v31, %s1267_s15  ;;  %669 = vrot.lane.b32.xlu1 %v1428_v44, %s1264_s21 }
  0xbe   : > { %654 = vrot.lane.b32.xlu0 %v1428_v44, %s1265_s22  ;;  %622 = vrot.lane.b32.xlu1 %v1389_v27, %s1267_s15 }
  0xc2   : > { %626 = vrot.lane.b32.xlu1 %v1391_v28, %s1267_s15  ;;  %620 = vrot.lane.b32.xlu0 %v527_v52, %s1267_s15 }
  0xc6   : > { %656 = vrot.lane.b32.xlu1 %v583_v43, %s1265_s22  ;;  %609 = vrot.lane.b32.xlu0 %v1400_v31, %s1268_s16  ;;  %s1219_s22 = sshll.u32 %s1679_s19, 3  ;;  %s1220_s19 = sshll.u32 %s1681_s14, 3 }
  0xc7   : > { %s497_s26 = scalar_lea.vmem %s1672_s9, %s1219_s22  ;;  %s502_s28 = scalar_lea.vmem %s1673_s10, %s1220_s19 }
  0xca   : > { %607 = vrot.lane.b32.xlu1 %v1389_v27, %s1268_s16  ;;  %641 = vrot.lane.b32.xlu0 %v1428_v44, %s1266_s25 }
  0xce   : > { %611 = vrot.lane.b32.xlu1 %v1391_v28, %s1268_s16  ;;  %592 = vrot.lane.b32.xlu0 %v1389_v27, %s1269_s17 }
  0xd2   : > { %605 = vrot.lane.b32.xlu1 %v527_v52, %s1268_s16  ;;  %596 = vrot.lane.b32.xlu0 %v1391_v28, %s1269_s17 }
  0xd6   : > { %594 = vrot.lane.b32.xlu1 %v1400_v31, %s1269_s17  ;;  %590 = vrot.lane.b32.xlu0 %v527_v52, %s1269_s17 }
  0xda   : > { %628 = vrot.lane.b32.xlu1 %v1428_v44, %s1267_s15  ;;  %598 = vrot.lane.b32.xlu0 %v1428_v44, %s1269_s17 }
  0xde   : > { %613 = vrot.lane.b32.xlu1 %v1428_v44, %s1268_s16  ;;  %712 = vrot.lane.b32.xlu0 %v1400_v31, %s1270_s18 }
  0xe2   : > { %710 = vrot.lane.b32.xlu1 %v1389_v27, %s1270_s18 }
  0xe6   : > { %708 = vrot.lane.b32.xlu1 %v527_v52, %s1270_s18 }
 0x104   : > { %v698_v53 = vpop.permute.xlu0 %697  ;;  %v694_v54 = vpop.permute.xlu1 %693 }
 0x105   : > { %788 = vrot.lane.b32.xlu1 %v694_v54, %s1270_s18 }
 0x108   : > { %v681_v55 = vpop.permute.xlu0 %680  ;;  %v696_v56 = vpop.permute.xlu1 %695 }
 0x109   : > { %v1486_v57 = vsel %vm703_vm9, %v696_v56, %v698_v53  ;;  %v1489_v58 = vsel %vm703_vm9, %v694_v54, %v696_v56 }
 0x10c   : > { %v664_v59 = vpop.permute.xlu0 %663  ;;  %v679_v60 = vpop.permute.xlu1 %678 }
 0x10d   : > { %768 = vrot.lane.b32.xlu1 %v664_v59, %s1270_s18  ;;  %778 = vrot.lane.b32.xlu0 %v679_v60, %s1270_s18  ;;  %v1494_v61 = vsel %vm688_vm10, %v679_v60, %v681_v55 }
 0x110   : > { %v668_v62 = vpop.permute.xlu0 %667  ;;  %v683_v63 = vpop.permute.xlu1 %682 }
 0x111   : > { %v1497_v0 = vsel %vm688_vm10, %v681_v55, %v683_v63 }
 0x114   : > { %v702_v2 = vpop.permute.xlu0 %701  ;;  %v666_v3 = vpop.permute.xlu1 %665 }
 0x115   : > { %v1500_v4 = vsel %vm673_vm11, %v666_v3, %v668_v62  ;;  %v674_v8 = vsel %vm673_vm11, %v664_v59, %v666_v3 }
 0x118   : > { %v651_v9 = vpop.permute.xlu0 %650  ;;  %v700_v10 = vpop.permute.xlu1 %699 }
 0x119   : > { %v707_v11 = vsel %vm703_vm9, %v700_v10, %v702_v2  ;;  %v706_v12 = vsel %vm703_vm9, %v698_v53, %v700_v10  ;;  %v1271_v2 = vmov 0.0   ;;  %vm1064_vm9 = vcmask 15360  }
 0x11a   : > { %939 = vmatprep.mubr.f32.mxu0 %v1271_v2  ;;  %1010 = vmatprep.mubr.f32.mxu1 %v1271_v2 }
 0x11c   : > { %v685_v14 = vpop.permute.xlu0 %684  ;;  %v649_v15 = vpop.permute.xlu1 %648 }
 0x11d   : > { %758 = vrot.lane.b32.xlu0 %v649_v15, %s1270_s18  ;;  %v659_v16 = vsel %vm658_vm12, %v649_v15, %v651_v9  ;;  %v691_v17 = vsel %vm688_vm10, %v683_v63, %v685_v14 }
 0x120   : > { %v636_v18 = vpop.permute.xlu0 %635  ;;  %v653_v19 = vpop.permute.xlu1 %652 }
 0x121   : > { %748 = vrot.lane.b32.xlu1 %v636_v18, %s1270_s18  ;;  %v660_v20 = vsel %vm658_vm12, %v651_v9, %v653_v19 }
 0x124   : > { %v640_v21 = vpop.permute.xlu0 %639  ;;  %v687_v22 = vpop.permute.xlu1 %686 }
 0x125   : > { %v692_v23 = vsel %vm688_vm10, %v685_v14, %v687_v22 }
 0x128   : > { %v672_v24 = vpop.permute.xlu0 %671  ;;  %v638_v25 = vpop.permute.xlu1 %637 }
 0x129   : > { %v645_v26 = vsel %vm643_vm13, %v638_v25, %v640_v21  ;;  %v644_v27 = vsel %vm643_vm13, %v636_v18, %v638_v25 }
 0x12c   : > { %v625_v29 = vpop.permute.xlu0 %624  ;;  %v670_v30 = vpop.permute.xlu1 %669 }
 0x12d   : > { %v677_v31 = vsel %vm673_vm11, %v670_v30, %v672_v24  ;;  %v676_v32 = vsel %vm673_vm11, %v668_v62, %v670_v30 }
 0x130   : > { %v655_v33 = vpop.permute.xlu0 %654  ;;  %v623_v34 = vpop.permute.xlu1 %622 }
 0x131   : > { %v632_v35 = vsel %vm630_vm14, %v623_v34, %v625_v29  ;;  %v661_v37 = vsel %vm658_vm12, %v653_v19, %v655_v33 }
 0x134   : > { %v1517_v38 = vpop.permute.xlu1 %626  ;;  %v621_v39 = vpop.permute.xlu0 %620 }
 0x135   : > { %v631_v40 = vsel %vm630_vm14, %v621_v39, %v623_v34 }
 0x138   : > { %v657_v41 = vpop.permute.xlu1 %656  ;;  %v610_v42 = vpop.permute.xlu0 %609 }
 0x13c   : > { %v608_v43 = vpop.permute.xlu1 %607  ;;  %v642_v45 = vpop.permute.xlu0 %641 }
 0x13d   : > { %756 = vrot.lane.b32.xlu0 %v642_v45, %s1270_s18  ;;  %v646_v46 = vsel %vm643_vm13, %v640_v21, %v642_v45 }
 0x140   : > { %v612_v47 = vpop.permute.xlu1 %611  ;;  %v593_v48 = vpop.permute.xlu0 %592 }
 0x141   : > { %v618_v62 = vsel %vm615_vm0, %v610_v42, %v612_v47 }
 0x144   : > { %v606_v49 = vpop.permute.xlu1 %605  ;;  %v597_v50 = vpop.permute.xlu0 %596 }
 0x148   : > { %v595_v51 = vpop.permute.xlu1 %594  ;;  %v591_v52 = vpop.permute.xlu0 %590 }
 0x149   : > { %v602_v63 = vsel %vm600_vm1, %v593_v48, %v595_v51 }
 0x14c   : > { %v629_v53 = vpop.permute.xlu1 %628  ;;  %v599_v54 = vpop.permute.xlu0 %598 }
 0x14d   : > { %746 = vrot.lane.b32.xlu1 %v629_v53, %s1270_s18  ;;  %v634_v3 = vsel %vm630_vm14, %v1517_v38, %v629_v53  ;;  %v604_v10 = vsel %vm600_vm1, %v597_v50, %v599_v54 }
 0x150   : > { %v614_v55 = vpop.permute.xlu1 %613 }
 0x151   : > { %736 = vrot.lane.b32.xlu0 %v614_v55, %s1270_s18  ;;  %726 = vrot.lane.b32.xlu1 %v599_v54, %s1270_s18  ;;  %v619_v9 = vsel %vm615_vm0, %v612_v47, %v614_v55 }
 0x154   : > { %v1525_v56 = vpop.permute.xlu1 %710 }
 0x155   : > { %792 = vrot.lane.b32.xlu0 %v1486_v57, %s1270_s18  ;;  %790 = vrot.lane.b32.xlu1 %v1489_v58, %s1270_s18  ;;  %v633_v57 = vsel %vm630_vm14, %v625_v29, %v1517_v38  ;;  %v662_v58 = vsel %vm658_vm12, %v655_v33, %v657_v41 }
 0x158   : > { %v709_v59 = vpop.permute.xlu1 %708 }
 0x159   : > { %780 = vrot.lane.b32.xlu0 %v1494_v61, %s1270_s18  ;;  %782 = vrot.lane.b32.xlu1 %v1497_v0, %s1270_s18  ;;  %v1537_v60 = vsel %vm798_vm15, %v709_v59, %v1525_v56  ;;  %v617_v61 = vsel %vm615_vm0, %v608_v43, %v610_v42  ;;  %v616_v0 = vsel %vm615_vm0, %v606_v49, %v608_v43 }
 0x15d   : > { %772 = vrot.lane.b32.xlu0 %v1500_v4, %s1270_s18  ;;  %770 = vrot.lane.b32.xlu1 %v674_v8, %s1270_s18  ;;  %v603_v4 = vsel %vm600_vm1, %v595_v51, %v597_v50  ;;  %v601_v8 = vsel %vm600_vm1, %v591_v52, %v593_v48 }
 0x161   : > { %796 = vrot.lane.b32.xlu0 %v707_v11, %s1270_s18  ;;  %794 = vrot.lane.b32.xlu1 %v706_v12, %s1270_s18  ;;  %v1584_v11 = vpop.permute.xlu0 %712 }
 0x165   : > { %760 = vrot.lane.b32.xlu0 %v659_v16, %s1270_s18  ;;  %762 = vrot.lane.b32.xlu1 %v660_v20, %s1270_s18 }
 0x169   : > { %784 = vrot.lane.b32.xlu0 %v691_v17, %s1270_s18  ;;  %786 = vrot.lane.b32.xlu1 %v692_v23, %s1270_s18 }
 0x16d   : > { %752 = vrot.lane.b32.xlu0 %v645_v26, %s1270_s18  ;;  %750 = vrot.lane.b32.xlu1 %v644_v27, %s1270_s18 }
 0x171   : > { %776 = vrot.lane.b32.xlu0 %v677_v31, %s1270_s18  ;;  %774 = vrot.lane.b32.xlu1 %v676_v32, %s1270_s18 }
 0x175   : > { %740 = vrot.lane.b32.xlu0 %v632_v35, %s1270_s18  ;;  %742 = vrot.lane.b32.xlu1 %v633_v57, %s1270_s18 }
 0x177   : > { %v789_v12 = vpop.permute.xlu1 %788 }
 0x179   : > { %764 = vrot.lane.b32.xlu0 %v661_v37, %s1270_s18  ;;  %766 = vrot.lane.b32.xlu1 %v662_v58, %s1270_s18 }
 0x17d   : > { %738 = vrot.lane.b32.xlu0 %v631_v40, %s1270_s18  ;;  %730 = vrot.lane.b32.xlu1 %v617_v61, %s1270_s18 }
 0x17f   : > { %v769_v14 = vpop.permute.xlu1 %768  ;;  %v779_v15 = vpop.permute.xlu0 %778 }
 0x181   : > { %732 = vrot.lane.b32.xlu0 %v618_v62, %s1270_s18  ;;  %754 = vrot.lane.b32.xlu1 %v646_v46, %s1270_s18 }
 0x185   : > { %720 = vrot.lane.b32.xlu0 %v602_v63, %s1270_s18  ;;  %728 = vrot.lane.b32.xlu1 %v616_v0, %s1270_s18 }
 0x189   : > { %744 = vrot.lane.b32.xlu0 %v634_v3, %s1270_s18  ;;  %722 = vrot.lane.b32.xlu1 %v603_v4, %s1270_s18 }
 0x18d   : > { %718 = vrot.lane.b32.xlu0 %v601_v8, %s1270_s18  ;;  %734 = vrot.lane.b32.xlu1 %v619_v9, %s1270_s18 }
 0x18f   : > { %v759_v16 = vpop.permute.xlu0 %758 }
 0x191   : > { %724 = vrot.lane.b32.xlu0 %v604_v10, %s1270_s18  ;;  %716 = vrot.lane.b32.xlu1 %v1428_v44, %s1270_s18 }
 0x193   : > { %v749_v17 = vpop.permute.xlu1 %748 }
 0x195   : > { %714 = vrot.lane.b32.xlu0 %v1391_v28, %s1270_s18 }
 0x1af   : > { %v1586_v18 = vpop.permute.xlu0 %756 }
 0x1bf   : > { %v1588_v19 = vpop.permute.xlu1 %746 }
 0x1c3   : > { %v1590_v20 = vpop.permute.xlu1 %726  ;;  %v1592_v21 = vpop.permute.xlu0 %736 }
 0x1c7   : > { %v791_v22 = vpop.permute.xlu1 %790  ;;  %v793_v44 = vpop.permute.xlu0 %792 }
 0x1c8   : > { %v832_v23 = vsel %vm798_vm15, %v791_v22, %v793_v44  ;;  %v831_v28 = vsel %vm798_vm15, %v789_v12, %v791_v22 }
 0x1c9   : > { %889 = vmatprep.subr.mxu0 %v832_v23 }
 0x1ca   : > { %890 = vmatpush1.msra.mxu0 %v831_v28 }
 0x1cb   : > { %v783_v24 = vpop.permute.xlu1 %782  ;;  %v781_v25 = vpop.permute.xlu0 %780 }
 0x1cc   : > { %v828_v26 = vsel %vm798_vm15, %v781_v25, %v783_v24  ;;  %v827_v27 = vsel %vm798_vm15, %v779_v15, %v781_v25 }
 0x1cd   : > { %891 = vmatprep.subr.mxu0 %v828_v26 }
 0x1ce   : > { %892 = vmatpush1.msra.mxu0 %v827_v27 }
 0x1cf   : > { %v771_v29 = vpop.permute.xlu1 %770  ;;  %v773_v30 = vpop.permute.xlu0 %772 }
 0x1d0   : > { %v824_v31 = vsel %vm798_vm15, %v771_v29, %v773_v30  ;;  %v823_v32 = vsel %vm798_vm15, %v769_v14, %v771_v29  ;;  %v584_v29 = vld [vmem:[%s1671_s8] sm:$0xff] }
 0x1d1   : > { %893 = vmatprep.subr.mxu0 %v824_v31 }
 0x1d2   : > { %894 = vmatpush1.msra.mxu0 %v823_v32 }
 0x1d3   : > { %v795_v33 = vpop.permute.xlu1 %794  ;;  %v797_v34 = vpop.permute.xlu0 %796 }
 0x1d4   : > { %v834_v35 = vsel %vm798_vm15, %v795_v33, %v797_v34  ;;  %v833_v37 = vsel %vm798_vm15, %v793_v44, %v795_v33 }
 0x1d5   : > { %960 = vmatprep.subr.mxu1 %v834_v35 }
 0x1d6   : > { %961 = vmatpush1.msra.mxu1 %v833_v37 }
 0x1d7   : > { %v763_v38 = vpop.permute.xlu1 %762  ;;  %v761_v39 = vpop.permute.xlu0 %760 }
 0x1d8   : > { %v820_v40 = vsel %vm798_vm15, %v761_v39, %v763_v38  ;;  %v819_v41 = vsel %vm798_vm15, %v759_v16, %v761_v39 }
 0x1d9   : > { %895 = vmatprep.subr.mxu0 %v820_v40 }
 0x1da   : > { %896 = vmatpush1.msra.mxu0 %v819_v41 }
 0x1db   : > { %v787_v42 = vpop.permute.xlu1 %786  ;;  %v785_v43 = vpop.permute.xlu0 %784 }
 0x1dc   : > { %v830_v45 = vsel %vm798_vm15, %v785_v43, %v787_v42  ;;  %v829_v46 = vsel %vm798_vm15, %v783_v24, %v785_v43 }
 0x1dd   : > { %962 = vmatprep.subr.mxu1 %v830_v45 }
 0x1de   : > { %963 = vmatpush1.msra.mxu1 %v829_v46 }
 0x1df   : > { %v751_v47 = vpop.permute.xlu1 %750  ;;  %v753_v48 = vpop.permute.xlu0 %752 }
 0x1e0   : > { %v816_v49 = vsel %vm798_vm15, %v751_v47, %v753_v48  ;;  %v815_v50 = vsel %vm798_vm15, %v749_v17, %v751_v47 }
 0x1e1   : > { %897 = vmatprep.subr.mxu0 %v816_v49 }
 0x1e2   : > { %898 = vmatpush1.msra.mxu0 %v815_v50 }
 0x1e3   : > { %v775_v51 = vpop.permute.xlu1 %774  ;;  %v777_v52 = vpop.permute.xlu0 %776 }
 0x1e4   : > { %v826_v53 = vsel %vm798_vm15, %v775_v51, %v777_v52  ;;  %v825_v54 = vsel %vm798_vm15, %v773_v30, %v775_v51 }
 0x1e5   : > { %964 = vmatprep.subr.mxu1 %v826_v53 }
 0x1e6   : > { %965 = vmatpush1.msra.mxu1 %v825_v54 }
 0x1e7   : > { %v743_v55 = vpop.permute.xlu1 %742  ;;  %v741_v59 = vpop.permute.xlu0 %740 }
 0x1e8   : > { %v812_v57 = vsel %vm798_vm15, %v741_v59, %v743_v55 }
 0x1e9   : > { %899 = vmatprep.subr.mxu0 %v812_v57 }
 0x1eb   : > { %v767_v58 = vpop.permute.xlu1 %766  ;;  %v765_v61 = vpop.permute.xlu0 %764 }
 0x1ec   : > { %v822_v62 = vsel %vm798_vm15, %v765_v61, %v767_v58  ;;  %v821_v63 = vsel %vm798_vm15, %v763_v38, %v765_v61 }
 0x1ed   : > { %966 = vmatprep.subr.mxu1 %v822_v62 }
 0x1ee   : > { %967 = vmatpush1.msra.mxu1 %v821_v63 }
 0x1ef   : > { %v731_v0 = vpop.permute.xlu1 %730  ;;  %v739_v2 = vpop.permute.xlu0 %738 }
 0x1f0   : > { %v811_v3 = vsel %vm798_vm15, %v739_v2, %v741_v59 }
 0x1f1   : > { %900 = vmatpush1.msra.mxu0 %v811_v3 }
 0x1f3   : > { %v755_v4 = vpop.permute.xlu1 %754  ;;  %v733_v8 = vpop.permute.xlu0 %732 }
 0x1f4   : > { %v808_v9 = vsel %vm798_vm15, %v731_v0, %v733_v8  ;;  %v818_v10 = vsel %vm798_vm15, %v755_v4, %v1586_v18  ;;  %v817_v12 = vsel %vm798_vm15, %v753_v48, %v755_v4 }
 0x1f5   : > { %901 = vmatprep.subr.mxu0 %v808_v9  ;;  %968 = vmatprep.subr.mxu1 %v818_v10 }
 0x1f6   : > { %969 = vmatpush1.msra.mxu1 %v817_v12 }
 0x1f7   : > { %v729_v14 = vpop.permute.xlu1 %728  ;;  %v721_v15 = vpop.permute.xlu0 %720 }
 0x1f8   : > { %v807_v16 = vsel %vm798_vm15, %v729_v14, %v731_v0 }
 0x1f9   : > { %902 = vmatpush1.msra.mxu0 %v807_v16 }
 0x1fb   : > { %v723_v17 = vpop.permute.xlu1 %722  ;;  %v745_v22 = vpop.permute.xlu0 %744 }
 0x1fc   : > { %v804_v44 = vsel %vm798_vm15, %v721_v15, %v723_v17  ;;  %v814_v23 = vsel %vm798_vm15, %v745_v22, %v1588_v19  ;;  %v813_v28 = vsel %vm798_vm15, %v743_v55, %v745_v22  ;;  %v800_v19 = vsel %vm798_vm15, %v1525_v56, %v1584_v11 }
 0x1fd   : > { %903 = vmatprep.subr.mxu0 %v804_v44  ;;  %970 = vmatprep.subr.mxu1 %v814_v23 }
 0x1fe   : > { %971 = vmatpush1.msra.mxu1 %v813_v28 }
 0x1ff   : > { %v735_v18 = vpop.permute.xlu1 %734  ;;  %v719_v24 = vpop.permute.xlu0 %718 }
 0x200   : > { %v803_v25 = vsel %vm798_vm15, %v719_v24, %v721_v15  ;;  %v810_v26 = vsel %vm798_vm15, %v735_v18, %v1592_v21  ;;  %v809_v27 = vsel %vm798_vm15, %v733_v8, %v735_v18 }
 0x201   : > { %904 = vmatpush1.msra.mxu0 %v803_v25  ;;  %972 = vmatprep.subr.mxu1 %v810_v26 }
 0x202   : > { %905 = vmatprep.subr.mxu0 %v800_v19  ;;  %973 = vmatpush1.msra.mxu1 %v809_v27 }
 0x203   : > { %906 = vmatpush1.msra.mxu0 %v1537_v60  ;;  %v725_v21 = vpop.permute.xlu0 %724  ;;  %v717_v31 = vpop.permute.xlu1 %716  ;;  %v1021_v60 = vld [vmem:[%s1351_s23] sm:$0xf] }
 0x204   : > { %1221 = vmatmul.mubr.msk.f32.vlgmr.msra.gmra.mxu0 %vm871_vm2, %v584_v29  ;;  %v806_v30 = vsel %vm798_vm15, %v725_v21, %v1590_v20  ;;  %v805_v56 = vsel %vm798_vm15, %v723_v17, %v725_v21  ;;  %vm1022_vm3 = vcmp.gt.f32.partialorder %v1021_v60, 0.5 }
 0x205   : > { %974 = vmatprep.subr.mxu1 %v806_v30  ;;  %v1023_v20 = vsel %vm1022_vm3, 1, %v1261_v1 }
 0x206   : > { %975 = vmatpush1.msra.mxu1 %v805_v56  ;;  %v1027_v35 = vrot.slane %v1023_v20, %v1363_v6  ;;  %v1031_v37 = vrot.slane %v1023_v20, %v553_v13  ;;  %v1035_v38 = vrot.slane %v1023_v20, %v557_v7  ;;  %v1039_v6 = vrot.slane %v1023_v20, %v1411_v36 }
 0x207   : > { %v715_v32 = vpop.permute.xlu0 %714 }
 0x208   : > { %v802_v33 = vsel %vm798_vm15, %v715_v32, %v717_v31  ;;  %v801_v34 = vsel %vm798_vm15, %v1584_v11, %v715_v32  ;;  %vm1040_vm4 = vcmp.eq.s32.totalorder %v1027_v35, 1  ;;  %vm1041_vm5 = vcmp.eq.s32.totalorder %v1031_v37, 1 }
 0x209   : > { %976 = vmatprep.subr.mxu1 %v802_v33  ;;  %vm1042_vm6 = vcmp.eq.s32.totalorder %v1035_v38, 1  ;;  %vm1043_vm7 = vcmp.eq.s32.totalorder %v1039_v6, 1 }
 0x20a   : > { %977 = vmatpush1.msra.mxu1 %v801_v34 }
 0x20b   : > { %1222 = vmatmul.mubr.msk.f32.vlgmr.msra.gmra.mxu1 %vm871_vm2, %v584_v29 }
 0x2c4   : > { %v941_v11 = vpop.f32.mrf.mxu0 }
 0x2c5   : > { %1017 = vst [vmem:[%s497_s26] sm:$0xff] %v941_v11  ;;  %v1044_v39 = vsel %vm1040_vm4, %v941_v11, 0.0 }
 0x2c6   : > { %v943_v40 = vpop.f32.mrf.mxu0  ;;  %v1053_v41 = vmul.f32 %v1044_v39, %v1044_v39 }
 0x2c7   : > { %1018 = vst [vmem:[%s497_s26 + $0x8] sm:$0xff] %v943_v40  ;;  %v1045_v1 = vsel %vm1041_vm5, %v943_v40, 0.0 }
 0x2c8   : > { %v1054_v42 = vmul.f32 %v1045_v1, %v1045_v1  ;;  %v1048_v13 = vadd.f32 %v1045_v1, %v1044_v39 }
 0x2ca   : > { %v1057_v46 = vadd.f32 %v1054_v42, %v1053_v41 }
 0x2cb   : > { %v1012_v43 = vpop.f32.mrf.mxu1 }
 0x2cc   : > { %1019 = vst [vmem:[%s497_s26 + $0x10] sm:$0xff] %v1012_v43  ;;  %v1046_v45 = vsel %vm1042_vm6, %v1012_v43, 0.0 }
 0x2cd   : > { %v1049_v47 = vadd.f32 %v1048_v13, %v1046_v45  ;;  %v1055_v5 = vmul.f32 %v1046_v45, %v1046_v45  ;;  %v1014_v7 = vpop.f32.mrf.mxu1 }
 0x2ce   : > { %1020 = vst [vmem:[%s497_s26 + $0x18] sm:$0xff] %v1014_v7  ;;  %v1047_v48 = vsel %vm1043_vm7, %v1014_v7, 0.0 }
 0x2cf   : > { %v1056_v49 = vmul.f32 %v1047_v48, %v1047_v48  ;;  %v1050_v50 = vadd.f32 %v1049_v47, %v1047_v48  ;;  %v1058_v51 = vadd.f32 %v1057_v46, %v1055_v5 }
 0x2d1   : > { %1051 = vadd.xlane.f32.xlu0 %v1050_v50  ;;  %v1059_v36 = vadd.f32 %v1058_v51, %v1056_v49 }
 0x2d3   : > { %1060 = vadd.xlane.f32.xlu1 %v1059_v36 }
 0x35a   : > { %v1052_v52 = vpop.xlane.xlu0 %1051 }
 0x35c   : > { %v1061_v53 = vpop.xlane.xlu1 %1060 }
 0x35d   : > { %v1063_v54 = vsel %vm1062_vm8, %v1052_v52, %v1061_v53 }
 0x35e   : > { %1065 = vst.msk [vmem:[%s502_s28] sm:$0xff] %vm1064_vm9, %v1063_v54 }
 0x35f PF: > { %s21_s13 = sadd.s32 1, %s1259_s13  }
 0x360   : > { %p18_p8 = scmp.ge.s32.totalorder %s21_s13, 4  }
 0x362   :  { %20 = sbr.rel (!%p18_p8) target bundleno = 1 (0x1), region = 113 }

</bundles_post_ra>
